<compile_context>
chip_gen: v6e
topology: v6e:2x2x1
jax: 0.10.0
libtpu: 0.0.40
codegen_flags: <defaults>
</compile_context>

<pallas_src>
import functools

import jax
import jax.numpy as jnp
from jax.experimental import pallas as pl
from jax.experimental.pallas import tpu as pltpu

# ----------------------------- model dimensions ------------------------------
F_NODE = 8         # input_shape  (node features)
F_EDGE = 4         # input_shape_edge
F_EDGE_PAD = 8     # edge features lane-padded to 8 (pad lanes are zero)
OUT_DIM = 2        # output_shape
MSG = 32           # message_size in NaiveConvolutionalLayer
HIDDEN = 128       # hidden_size in _graph_mlp
N_NODES = 16
N_EDGES = 32
N_GRAPHS = 2
N_SAMPLES = 8      # samples per pallas_call (grid axis)
BN_EPS = 1e-5

# ------------------------- packed conv blob layout ----------------------------
# per layer [C_ROWS, MSG], all slices (8,128)-tile aligned
C_EW = 0                                # edge-MLP weight rows 0..23
C_EW_ROWS = 2 * F_NODE + F_EDGE_PAD     # 24: [x0(8) | x1(8) | ea(4) | zero(4)]
C_EB = 24                               # edge-MLP bias row
C_NW = 32                               # node-MLP weight rows 32..71
C_NW_ROWS = F_NODE + MSG                # 40: [x(8) | msum(32)]; lanes 8..31 zero
C_NB = C_NW + C_NW_ROWS                 # 72: node-MLP bias row (lanes 8..31 zero)
C_ROWS = 80

# ------------------------- packed graph-MLP blob layout -----------------------
G_WG1 = 0
G_BG1 = F_NODE                          # 8
G_GM1 = F_NODE + 1                      # 9
G_BT1 = F_NODE + 2                      # 10
G_WG2 = 16                              # 8-aligned
G_BG2 = G_WG2 + HIDDEN                  # 144
G_GM2 = G_BG2 + 1                       # 145
G_BT2 = G_GM2 + 1                       # 146
G_WG3 = 152                             # 8-aligned (wg3 lane-padded to HIDDEN)
G_BG3 = G_WG3 + HIDDEN                  # 280
G_ROWS = 288

# ------------------------- packed int32 index tile ----------------------------
# rows 0..E-1 : lane 0 = node0[e], lane 1 = node1[e]   (column form, fused gather)
# row  E      : node0 as a row (lanes 0..E-1)          (scatter one-hot)
# row  E+1    : batch as a row (lanes 0..N-1)          (graph pooling one-hot)
IDX_N0ROW = N_EDGES
IDX_BROW = N_EDGES + 1
IDX_ROWS = ((N_EDGES + 2 + 7) // 8) * 8          # 40
IDX_LANES = 128


# --------------------------------- kernel ------------------------------------
def pmhci_kernel(idx_ref, x_ref, ea_ref, conv_ref, graph_ref, out_ref):
    f32 = jnp.float32
    n_nodes = x_ref.shape[1]
    n_edges = ea_ref.shape[1]
    n_graphs = out_ref.shape[1]

    x = x_ref[0]                                          # [N, F]
    ea = ea_ref[0]                                        # [E, 8] (lanes 4..7 zero)
    idxt = idx_ref[0]                                     # [IDX_ROWS, 128] int32

    node0_col = idxt[0:n_edges, 0:1]                      # [E, 1]
    node1_col = idxt[0:n_edges, 1:2]                      # [E, 1]
    node01_col = jnp.concatenate([node0_col, node1_col], axis=0)   # [2E, 1]
    n0_row = idxt[IDX_N0ROW:IDX_N0ROW + 1, 0:n_edges]     # [1, E]
    b_row = idxt[IDX_BROW:IDX_BROW + 1, 0:n_nodes]        # [1, N]

    # one-hot gather / scatter matrices built in-kernel (VPU only)
    lane_node = jax.lax.broadcasted_iota(jnp.int32, (2 * n_edges, n_nodes), 1)
    ohcat = (lane_node == node01_col).astype(f32)         # [2E, N] fused gather
    sub_node = jax.lax.broadcasted_iota(jnp.int32, (n_nodes, n_edges), 0)
    oh0t = (sub_node == n0_row).astype(f32)               # [N, E] scatter_sum

    # --- 3 x NaiveConvolutionalLayer (4 MXU dots per layer) -------------------
    for layer in range(3):
        we_w = conv_ref[layer, C_EW:C_EW + C_EW_ROWS, :]          # [24, 32]
        we_b = conv_ref[layer, C_EB:C_EB + 1, :]                  # [1, 32]
        wn_w = conv_ref[layer, C_NW:C_NW + C_NW_ROWS, :]          # [40, 32]
        wn_b = conv_ref[layer, C_NB:C_NB + 1, :]                  # [1, 32]

        # fused gather of node features at both edge ends
        x01 = jnp.dot(ohcat, x, preferred_element_type=f32)       # [2E, F]
        ecat = jnp.concatenate(
            [x01[0:n_edges], x01[n_edges:2 * n_edges], ea], axis=1)  # [E, 24]
        # edge MLP (fused single dot; pad rows of we_w are zero)
        msg = jnp.maximum(
            jnp.dot(ecat, we_w, preferred_element_type=f32) + we_b, 0.0)  # [E, 32]
        # scatter_sum of messages onto node0 indices
        msum = jnp.dot(oh0t, msg, preferred_element_type=f32)     # [N, 32]
        # node MLP (full 32-lane weight; lanes 8..31 are zero)
        ncat = jnp.concatenate([x, msum], axis=1)                 # [N, 40]
        h = jnp.maximum(
            jnp.dot(ncat, wn_w, preferred_element_type=f32) + wn_b, 0.0)  # [N, 32]
        x = h[:, 0:F_NODE]                                        # [N, 8]

    # --- scatter_mean over graphs (1/count folded into the one-hot) -----------
    sub_g = jax.lax.broadcasted_iota(jnp.int32, (n_graphs, n_nodes), 0)
    ghot = (sub_g == b_row).astype(f32)                   # [G, N]
    counts = jnp.sum(ghot, axis=1, keepdims=True)         # [G, 1]
    g = jnp.dot(ghot * (1.0 / jnp.maximum(counts, 1.0)), x,
                preferred_element_type=f32)               # [G, F]

    # --- graph MLP: Linear -> BN -> ReLU -> Linear -> BN -> ReLU -> Linear ----
    # exact f32 (2-sample training-mode BN is sign-sensitive)
    def bn(v, gm, bt):
        mu = jnp.mean(v, axis=0, keepdims=True)
        var = jnp.mean((v - mu) * (v - mu), axis=0, keepdims=True)
        return gm * (v - mu) * jax.lax.rsqrt(var + BN_EPS) + bt

    z = (jnp.dot(g, graph_ref[G_WG1:G_WG1 + F_NODE, :],
                 preferred_element_type=f32)
         + graph_ref[G_BG1:G_BG1 + 1, :])
    z = jnp.maximum(bn(z, graph_ref[G_GM1:G_GM1 + 1, :],
                       graph_ref[G_BT1:G_BT1 + 1, :]), 0.0)

    z = (jnp.dot(z, graph_ref[G_WG2:G_WG2 + HIDDEN, :],
                 preferred_element_type=f32)
         + graph_ref[G_BG2:G_BG2 + 1, :])
    z = jnp.maximum(bn(z, graph_ref[G_GM2:G_GM2 + 1, :],
                       graph_ref[G_BT2:G_BT2 + 1, :]), 0.0)

    # lane-dense output: write the full [G, 128]; wrapper slices [:, :OUT_DIM]
    out_ref[0] = (jnp.dot(z, graph_ref[G_WG3:G_WG3 + HIDDEN, :],
                          preferred_element_type=f32)
                  + graph_ref[G_BG3:G_BG3 + 1, :])


# --------------------------------- wrapper -----------------------------------
@functools.partial(jax.jit, static_argnames=("num_graphs",))
def pmhci_forward(x, edge_index, edge_attr, batch, conv_blob, graph_blob,
                  num_graphs):
    """x:[S,N,F], edge_index:[S,2,E], edge_attr:[S,E,Fe], batch:[S,N]."""
    S, N, F = x.shape
    E = edge_attr.shape[1]

    # One packed int32 index tile per sample (tiny XLA-side glue).
    ei = edge_index.astype(jnp.int32)
    idx = jnp.zeros((S, IDX_ROWS, IDX_LANES), jnp.int32)
    idx = idx.at[:, 0:E, 0].set(ei[:, 0, :])
    idx = idx.at[:, 0:E, 1].set(ei[:, 1, :])
    idx = idx.at[:, IDX_N0ROW, 0:E].set(ei[:, 0, :])
    idx = idx.at[:, IDX_BROW, 0:N].set(batch.astype(jnp.int32))
    ea_pad = jnp.pad(edge_attr.astype(jnp.float32),
                     ((0, 0), (0, 0), (0, F_EDGE_PAD - edge_attr.shape[2])))

    per_layer = (2 * (2 * E) * N * F                 # fused gather
                 + 2 * E * C_EW_ROWS * MSG           # edge MLP
                 + 2 * N * E * MSG                   # scatter_sum
                 + 2 * N * C_NW_ROWS * MSG)          # node MLP
    per_sample = (3 * per_layer
                  + 2 * num_graphs * N * F           # graph pooling
                  + 2 * num_graphs * F * HIDDEN      # graph MLP 1
                  + 2 * 2 * num_graphs * HIDDEN * HIDDEN)  # graph MLP 2 & 3
    bytes_accessed = 4 * (S * (IDX_ROWS * IDX_LANES + N * F + E * F_EDGE_PAD
                               + num_graphs * HIDDEN)
                          + 3 * C_ROWS * MSG + G_ROWS * HIDDEN)

    out = pl.pallas_call(
        pmhci_kernel,
        out_shape=jax.ShapeDtypeStruct((S, num_graphs, HIDDEN), jnp.float32),
        grid=(S,),
        in_specs=[
            pl.BlockSpec((1, IDX_ROWS, IDX_LANES), lambda s: (s, 0, 0)),
            pl.BlockSpec((1, N, F), lambda s: (s, 0, 0)),
            pl.BlockSpec((1, E, F_EDGE_PAD), lambda s: (s, 0, 0)),
            pl.BlockSpec((3, C_ROWS, MSG), lambda s: (0, 0, 0)),   # shared weights
            pl.BlockSpec((G_ROWS, HIDDEN), lambda s: (0, 0)),      # shared weights
        ],
        out_specs=pl.BlockSpec((1, num_graphs, HIDDEN), lambda s: (s, 0, 0)),
        compiler_params=pltpu.CompilerParams(
            dimension_semantics=("parallel",),
            vmem_limit_bytes=2 * 1024 * 1024),
        cost_estimate=pl.CostEstimate(flops=S * per_sample,
                                      transcendentals=S * 2 * HIDDEN,
                                      bytes_accessed=bytes_accessed),
    )(idx, x.astype(jnp.float32), ea_pad, conv_blob, graph_blob)
    return out[:, :, :OUT_DIM]


# --------------------------- parameter blob packing ---------------------------
def pack_params(params):
    """One-time host-side packing of the 17 parameter tensors into 2 blobs."""
    (we0, we1, wee, be, wnx, wnm, bnb,
     wg1, bg1, gm1, bt1, wg2, bg2, gm2, bt2, wg3, bg3) = params

    layers = []
    for l in range(3):
        e_w = jnp.concatenate([we0[l], we1[l], wee[l],
                               jnp.zeros((F_EDGE_PAD - F_EDGE, MSG), jnp.float32)],
                              axis=0)                                     # [24, 32]
        e_b = jnp.concatenate([be[l], jnp.zeros((7, MSG), jnp.float32)], axis=0)  # [8, 32]
        n_w = jnp.pad(jnp.concatenate([wnx[l], wnm[l]], axis=0),
                      ((0, 0), (0, MSG - F_NODE)))                        # [40, 32]
        n_b = jnp.pad(bnb[l], ((0, 7), (0, MSG - F_NODE)))                # [8, 32]
        layers.append(jnp.concatenate([e_w, e_b, n_w, n_b], axis=0))      # [80, 32]
    conv_blob = jnp.stack(layers).astype(jnp.float32)                     # [3, 80, 32]

    def lanes(a):
        return jnp.pad(a, ((0, 0), (0, HIDDEN - a.shape[1])))

    graph_blob = jnp.concatenate([
        wg1, bg1, gm1, bt1,                                          # rows 0..10
        jnp.zeros((G_WG2 - (F_NODE + 3), HIDDEN), jnp.float32),      # pad -> 16
        wg2, bg2, gm2, bt2,                                          # rows 16..146
        jnp.zeros((G_WG3 - (G_BT2 + 1), HIDDEN), jnp.float32),       # pad -> 152
        lanes(wg3), lanes(bg3),                                      # rows 152..280
        jnp.zeros((G_ROWS - (G_BG3 + 1), HIDDEN), jnp.float32),      # pad -> 288
    ], axis=0).astype(jnp.float32)                                   # [288, 128]
    return conv_blob, graph_blob


# ------------------------- deterministic parameter init ----------------------
def init_params(key):
    ks = jax.random.split(key, 32)
    i = 0

    def nxt(shape, scale=0.1):
        nonlocal i
        k = ks[i]
        i += 1
        return (scale * jax.random.normal(k, shape)).astype(jnp.float32)

    we0 = nxt((3, F_NODE, MSG))          # edge mlp weight block for node0 feats
    we1 = nxt((3, F_NODE, MSG))          # edge mlp weight block for node1 feats
    wee = nxt((3, F_EDGE, MSG))          # edge mlp weight block for edge feats
    be = nxt((3, 1, MSG))
    wnx = nxt((3, F_NODE, F_NODE))       # node mlp weight block for node feats
    wnm = nxt((3, MSG, F_NODE))          # node mlp weight block for message sums
    bnb = nxt((3, 1, F_NODE))

    wg1 = nxt((F_NODE, HIDDEN))
    bg1 = nxt((1, HIDDEN))
    gm1 = 1.0 + nxt((1, HIDDEN), 0.05)   # BatchNorm gamma
    bt1 = nxt((1, HIDDEN), 0.05)         # BatchNorm beta
    wg2 = nxt((HIDDEN, HIDDEN))
    bg2 = nxt((1, HIDDEN))
    gm2 = 1.0 + nxt((1, HIDDEN), 0.05)
    bt2 = nxt((1, HIDDEN), 0.05)
    wg3 = nxt((HIDDEN, OUT_DIM))
    bg3 = nxt((1, OUT_DIM))

    return (we0, we1, wee, be, wnx, wnm, bnb,
            wg1, bg1, gm1, bt1, wg2, bg2, gm2, bt2, wg3, bg3)


# ------------------------------ pure-JAX reference ----------------------------
def reference_forward_single(x, edge_index, edge_attr, batch, params, num_graphs):
    (we0, we1, wee, be, wnx, wnm, bnb,
     wg1, bg1, gm1, bt1, wg2, bg2, gm2, bt2, wg3, bg3) = params
    node0, node1 = edge_index[0], edge_index[1]
    h = x
    for l in range(3):
        x0 = h[node0]
        x1 = h[node1]
        msg = jnp.maximum(x0 @ we0[l] + x1 @ we1[l] + edge_attr @ wee[l] + be[l], 0.0)
        sums = jax.ops.segment_sum(msg, node0, num_segments=h.shape[0])
        h = jnp.maximum(h @ wnx[l] + sums @ wnm[l] + bnb[l], 0.0)
    gsum = jax.ops.segment_sum(h, batch, num_segments=num_graphs)
    cnt = jax.ops.segment_sum(jnp.ones((h.shape[0], 1)), batch, num_segments=num_graphs)
    g = gsum / jnp.maximum(cnt, 1.0)

    def bn(v, gamma, beta):
        mu = jnp.mean(v, axis=0, keepdims=True)
        var = jnp.mean((v - mu) ** 2, axis=0, keepdims=True)
        return gamma * (v - mu) / jnp.sqrt(var + BN_EPS) + beta

    z = jnp.maximum(bn(g @ wg1 + bg1, gm1, bt1), 0.0)
    z = jnp.maximum(bn(z @ wg2 + bg2, gm2, bt2), 0.0)
    return z @ wg3 + bg3


def reference_forward(x, edge_index, edge_attr, batch, params, num_graphs):
    return jax.vmap(
        lambda xi, ei, ai, bi: reference_forward_single(xi, ei, ai, bi, params,
                                                        num_graphs)
    )(x, edge_index, edge_attr, batch)


# ----------------------------------- main -------------------------------------
if __name__ == "__main__":
    key = jax.random.PRNGKey(0)
    k_x, k_e, k_i0, k_i1, k_p = jax.random.split(key, 5)

    x = jax.random.normal(k_x, (N_SAMPLES, N_NODES, F_NODE), dtype=jnp.float32)
    edge_attr = jax.random.normal(k_e, (N_SAMPLES, N_EDGES, F_EDGE),
                                  dtype=jnp.float32)
    edge_index = jnp.stack([
        jax.random.randint(k_i0, (N_SAMPLES, N_EDGES), 0, N_NODES),
        jax.random.randint(k_i1, (N_SAMPLES, N_EDGES), 0, N_NODES),
    ], axis=1)                                               # [S, 2, E]
    batch = jnp.tile(jnp.repeat(jnp.arange(N_GRAPHS, dtype=jnp.int32),
                                N_NODES // N_GRAPHS)[None, :],
                     (N_SAMPLES, 1))                         # [S, N]

    params = init_params(k_p)
    conv_blob, graph_blob = pack_params(params)              # packed once

    out = pmhci_forward(x, edge_index, edge_attr, batch, conv_blob, graph_blob,
                        num_graphs=N_GRAPHS)
    out = jax.block_until_ready(out)

    ref = reference_forward(x, edge_index, edge_attr, batch, params, N_GRAPHS)
    assert out.shape == (N_SAMPLES, N_GRAPHS, OUT_DIM)
    assert jnp.allclose(out, ref, rtol=1e-4, atol=1e-4), (out, ref)

    print("KERNEL_OK")
</pallas_src>

<mosaic_0001>
module attributes {stable_mosaic.version = 11 : i64} {
  func.func @pmhci_kernel(%arg0: i32, %arg1: memref<1x40x128xi32, #tpu.memory_space<vmem>>, %arg2: memref<1x16x8xf32, #tpu.memory_space<vmem>>, %arg3: memref<1x32x8xf32, #tpu.memory_space<vmem>>, %arg4: memref<3x80x32xf32, #tpu.memory_space<vmem>>, %arg5: memref<288x128xf32, #tpu.memory_space<vmem>>, %arg6: memref<1x2x128xf32, #tpu.memory_space<vmem>>) attributes {dimension_semantics = [#tpu.dimension_semantics<parallel>], iteration_bounds = array<i64: 8>, scalar_prefetch = 0 : i64, scratch_operands = 0 : i64, tpu.core_type = #tpu.core_type<tc>, window_params = [{transform_indices = @transform_0, window_bounds = array<i64: 1, 40, 128>}, {transform_indices = @transform_1, window_bounds = array<i64: 1, 16, 8>}, {transform_indices = @transform_2, window_bounds = array<i64: 1, 32, 8>}, {pipeline_mode = #tpu.pipeline_mode<synchronous>, transform_indices = @transform_3, window_bounds = array<i64: 3, 80, 32>}, {pipeline_mode = #tpu.pipeline_mode<synchronous>, transform_indices = @transform_4, window_bounds = array<i64: 288, 128>}, {transform_indices = @transform_5, window_bounds = array<i64: 1, 2, 128>}]} {
    %c0 = arith.constant 0 : index
    %c0_0 = arith.constant 0 : index
    %c0_1 = arith.constant 0 : index
    %0 = vector.load %arg2[%c0, %c0_0, %c0_1] : memref<1x16x8xf32, #tpu.memory_space<vmem>>, vector<1x16x8xf32>
    %1 = vector.shape_cast %0 : vector<1x16x8xf32> to vector<16x8xf32>
    %c0_2 = arith.constant 0 : index
    %c0_3 = arith.constant 0 : index
    %c0_4 = arith.constant 0 : index
    %2 = vector.load %arg3[%c0_2, %c0_3, %c0_4] : memref<1x32x8xf32, #tpu.memory_space<vmem>>, vector<1x32x8xf32>
    %3 = vector.shape_cast %2 : vector<1x32x8xf32> to vector<32x8xf32>
    %c0_5 = arith.constant 0 : index
    %c0_6 = arith.constant 0 : index
    %c0_7 = arith.constant 0 : index
    %4 = vector.load %arg1[%c0_5, %c0_6, %c0_7] : memref<1x40x128xi32, #tpu.memory_space<vmem>>, vector<1x40x128xi32>
    %5 = vector.shape_cast %4 : vector<1x40x128xi32> to vector<40x128xi32>
    %6 = vector.extract_strided_slice %5 {offsets = [0, 0], sizes = [32, 1], strides = [1, 1]} : vector<40x128xi32> to vector<32x1xi32>
    %7 = vector.extract_strided_slice %5 {offsets = [0, 1], sizes = [32, 1], strides = [1, 1]} : vector<40x128xi32> to vector<32x1xi32>
    %8 = tpu.concatenate %6, %7 in 0 : vector<32x1xi32>, vector<32x1xi32> -> vector<64x1xi32>
    %9 = vector.extract_strided_slice %5 {offsets = [32, 0], sizes = [1, 32], strides = [1, 1]} : vector<40x128xi32> to vector<1x32xi32>
    %10 = vector.extract_strided_slice %5 {offsets = [33, 0], sizes = [1, 16], strides = [1, 1]} : vector<40x128xi32> to vector<1x16xi32>
    %11 = tpu.iota {dimensions = array<i32: 1>} : vector<64x16xi32>
    %12 = vector.broadcast %8 : vector<64x1xi32> to vector<64x16xi32>
    %13 = arith.cmpi eq, %11, %12 : vector<64x16xi32>
    %14 = arith.extui %13 : vector<64x16xi1> to vector<64x16xi32>
    %15 = arith.sitofp %14 : vector<64x16xi32> to vector<64x16xf32>
    %16 = tpu.iota {dimensions = array<i32: 0>} : vector<16x32xi32>
    %17 = vector.broadcast %9 : vector<1x32xi32> to vector<16x32xi32>
    %18 = arith.cmpi eq, %16, %17 : vector<16x32xi32>
    %19 = arith.extui %18 : vector<16x32xi1> to vector<16x32xi32>
    %20 = arith.sitofp %19 : vector<16x32xi32> to vector<16x32xf32>
    %c0_8 = arith.constant 0 : index
    %c0_9 = arith.constant 0 : index
    %c0_10 = arith.constant 0 : index
    %21 = vector.load %arg4[%c0_8, %c0_9, %c0_10] : memref<3x80x32xf32, #tpu.memory_space<vmem>>, vector<1x24x32xf32>
    %22 = vector.shape_cast %21 : vector<1x24x32xf32> to vector<24x32xf32>
    %c0_11 = arith.constant 0 : index
    %c24 = arith.constant 24 : index
    %c0_12 = arith.constant 0 : index
    %23 = vector.load %arg4[%c0_11, %c24, %c0_12] : memref<3x80x32xf32, #tpu.memory_space<vmem>>, vector<1x1x32xf32>
    %24 = vector.shape_cast %23 : vector<1x1x32xf32> to vector<1x32xf32>
    %c0_13 = arith.constant 0 : index
    %c32 = arith.constant 32 : index
    %c0_14 = arith.constant 0 : index
    %25 = vector.load %arg4[%c0_13, %c32, %c0_14] : memref<3x80x32xf32, #tpu.memory_space<vmem>>, vector<1x40x32xf32>
    %26 = vector.shape_cast %25 : vector<1x40x32xf32> to vector<40x32xf32>
    %c0_15 = arith.constant 0 : index
    %c72 = arith.constant 72 : index
    %c0_16 = arith.constant 0 : index
    %27 = vector.load %arg4[%c0_15, %c72, %c0_16] : memref<3x80x32xf32, #tpu.memory_space<vmem>>, vector<1x1x32xf32>
    %28 = vector.shape_cast %27 : vector<1x1x32xf32> to vector<1x32xf32>
    %cst = arith.constant dense<0.000000e+00> : vector<64x8xf32>
    %29 = tpu.matmul %15, %1, %cst {dimension_numbers = #tpu.dot_dimension_numbers<[1], [0], [0], [1], [0, 0, 1, 1], [], []>} : vector<64x16xf32>, vector<16x8xf32>, vector<64x8xf32> -> vector<64x8xf32>
    %30 = vector.extract_strided_slice %29 {offsets = [0, 0], sizes = [32, 8], strides = [1, 1]} : vector<64x8xf32> to vector<32x8xf32>
    %31 = vector.extract_strided_slice %29 {offsets = [32, 0], sizes = [32, 8], strides = [1, 1]} : vector<64x8xf32> to vector<32x8xf32>
    %32 = tpu.concatenate %30, %31, %3 in 1 : vector<32x8xf32>, vector<32x8xf32>, vector<32x8xf32> -> vector<32x24xf32>
    %cst_17 = arith.constant dense<0.000000e+00> : vector<32x32xf32>
    %33 = tpu.matmul %32, %22, %cst_17 {dimension_numbers = #tpu.dot_dimension_numbers<[1], [0], [0], [1], [0, 0, 1, 1], [], []>} : vector<32x24xf32>, vector<24x32xf32>, vector<32x32xf32> -> vector<32x32xf32>
    %34 = vector.broadcast %24 : vector<1x32xf32> to vector<32x32xf32>
    %35 = arith.addf %33, %34 : vector<32x32xf32>
    %cst_18 = arith.constant 0.000000e+00 : f32
    %36 = vector.broadcast %cst_18 : f32 to vector<32x32xf32>
    %37 = arith.maximumf %35, %36 : vector<32x32xf32>
    %cst_19 = arith.constant dense<0.000000e+00> : vector<16x32xf32>
    %38 = tpu.matmul %20, %37, %cst_19 {dimension_numbers = #tpu.dot_dimension_numbers<[1], [0], [0], [1], [0, 0, 1, 1], [], []>} : vector<16x32xf32>, vector<32x32xf32>, vector<16x32xf32> -> vector<16x32xf32>
    %39 = tpu.concatenate %1, %38 in 1 : vector<16x8xf32>, vector<16x32xf32> -> vector<16x40xf32>
    %cst_20 = arith.constant dense<0.000000e+00> : vector<16x32xf32>
    %40 = tpu.matmul %39, %26, %cst_20 {dimension_numbers = #tpu.dot_dimension_numbers<[1], [0], [0], [1], [0, 0, 1, 1], [], []>} : vector<16x40xf32>, vector<40x32xf32>, vector<16x32xf32> -> vector<16x32xf32>
    %41 = vector.broadcast %28 : vector<1x32xf32> to vector<16x32xf32>
    %42 = arith.addf %40, %41 : vector<16x32xf32>
    %cst_21 = arith.constant 0.000000e+00 : f32
    %43 = vector.broadcast %cst_21 : f32 to vector<16x32xf32>
    %44 = arith.maximumf %42, %43 : vector<16x32xf32>
    %45 = vector.extract_strided_slice %44 {offsets = [0, 0], sizes = [16, 8], strides = [1, 1]} : vector<16x32xf32> to vector<16x8xf32>
    %c1 = arith.constant 1 : index
    %c0_22 = arith.constant 0 : index
    %c0_23 = arith.constant 0 : index
    %46 = vector.load %arg4[%c1, %c0_22, %c0_23] : memref<3x80x32xf32, #tpu.memory_space<vmem>>, vector<1x24x32xf32>
    %47 = vector.shape_cast %46 : vector<1x24x32xf32> to vector<24x32xf32>
    %c1_24 = arith.constant 1 : index
    %c24_25 = arith.constant 24 : index
    %c0_26 = arith.constant 0 : index
    %48 = vector.load %arg4[%c1_24, %c24_25, %c0_26] : memref<3x80x32xf32, #tpu.memory_space<vmem>>, vector<1x1x32xf32>
    %49 = vector.shape_cast %48 : vector<1x1x32xf32> to vector<1x32xf32>
    %c1_27 = arith.constant 1 : index
    %c32_28 = arith.constant 32 : index
    %c0_29 = arith.constant 0 : index
    %50 = vector.load %arg4[%c1_27, %c32_28, %c0_29] : memref<3x80x32xf32, #tpu.memory_space<vmem>>, vector<1x40x32xf32>
    %51 = vector.shape_cast %50 : vector<1x40x32xf32> to vector<40x32xf32>
    %c1_30 = arith.constant 1 : index
    %c72_31 = arith.constant 72 : index
    %c0_32 = arith.constant 0 : index
    %52 = vector.load %arg4[%c1_30, %c72_31, %c0_32] : memref<3x80x32xf32, #tpu.memory_space<vmem>>, vector<1x1x32xf32>
    %53 = vector.shape_cast %52 : vector<1x1x32xf32> to vector<1x32xf32>
    %cst_33 = arith.constant dense<0.000000e+00> : vector<64x8xf32>
    %54 = tpu.matmul %15, %45, %cst_33 {dimension_numbers = #tpu.dot_dimension_numbers<[1], [0], [0], [1], [0, 0, 1, 1], [], []>} : vector<64x16xf32>, vector<16x8xf32>, vector<64x8xf32> -> vector<64x8xf32>
    %55 = vector.extract_strided_slice %54 {offsets = [0, 0], sizes = [32, 8], strides = [1, 1]} : vector<64x8xf32> to vector<32x8xf32>
    %56 = vector.extract_strided_slice %54 {offsets = [32, 0], sizes = [32, 8], strides = [1, 1]} : vector<64x8xf32> to vector<32x8xf32>
    %57 = tpu.concatenate %55, %56, %3 in 1 : vector<32x8xf32>, vector<32x8xf32>, vector<32x8xf32> -> vector<32x24xf32>
    %cst_34 = arith.constant dense<0.000000e+00> : vector<32x32xf32>
    %58 = tpu.matmul %57, %47, %cst_34 {dimension_numbers = #tpu.dot_dimension_numbers<[1], [0], [0], [1], [0, 0, 1, 1], [], []>} : vector<32x24xf32>, vector<24x32xf32>, vector<32x32xf32> -> vector<32x32xf32>
    %59 = vector.broadcast %49 : vector<1x32xf32> to vector<32x32xf32>
    %60 = arith.addf %58, %59 : vector<32x32xf32>
    %cst_35 = arith.constant 0.000000e+00 : f32
    %61 = vector.broadcast %cst_35 : f32 to vector<32x32xf32>
    %62 = arith.maximumf %60, %61 : vector<32x32xf32>
    %cst_36 = arith.constant dense<0.000000e+00> : vector<16x32xf32>
    %63 = tpu.matmul %20, %62, %cst_36 {dimension_numbers = #tpu.dot_dimension_numbers<[1], [0], [0], [1], [0, 0, 1, 1], [], []>} : vector<16x32xf32>, vector<32x32xf32>, vector<16x32xf32> -> vector<16x32xf32>
    %64 = tpu.concatenate %45, %63 in 1 : vector<16x8xf32>, vector<16x32xf32> -> vector<16x40xf32>
    %cst_37 = arith.constant dense<0.000000e+00> : vector<16x32xf32>
    %65 = tpu.matmul %64, %51, %cst_37 {dimension_numbers = #tpu.dot_dimension_numbers<[1], [0], [0], [1], [0, 0, 1, 1], [], []>} : vector<16x40xf32>, vector<40x32xf32>, vector<16x32xf32> -> vector<16x32xf32>
    %66 = vector.broadcast %53 : vector<1x32xf32> to vector<16x32xf32>
    %67 = arith.addf %65, %66 : vector<16x32xf32>
    %cst_38 = arith.constant 0.000000e+00 : f32
    %68 = vector.broadcast %cst_38 : f32 to vector<16x32xf32>
    %69 = arith.maximumf %67, %68 : vector<16x32xf32>
    %70 = vector.extract_strided_slice %69 {offsets = [0, 0], sizes = [16, 8], strides = [1, 1]} : vector<16x32xf32> to vector<16x8xf32>
    %c2 = arith.constant 2 : index
    %c0_39 = arith.constant 0 : index
    %c0_40 = arith.constant 0 : index
    %71 = vector.load %arg4[%c2, %c0_39, %c0_40] : memref<3x80x32xf32, #tpu.memory_space<vmem>>, vector<1x24x32xf32>
    %72 = vector.shape_cast %71 : vector<1x24x32xf32> to vector<24x32xf32>
    %c2_41 = arith.constant 2 : index
    %c24_42 = arith.constant 24 : index
    %c0_43 = arith.constant 0 : index
    %73 = vector.load %arg4[%c2_41, %c24_42, %c0_43] : memref<3x80x32xf32, #tpu.memory_space<vmem>>, vector<1x1x32xf32>
    %74 = vector.shape_cast %73 : vector<1x1x32xf32> to vector<1x32xf32>
    %c2_44 = arith.constant 2 : index
    %c32_45 = arith.constant 32 : index
    %c0_46 = arith.constant 0 : index
    %75 = vector.load %arg4[%c2_44, %c32_45, %c0_46] : memref<3x80x32xf32, #tpu.memory_space<vmem>>, vector<1x40x32xf32>
    %76 = vector.shape_cast %75 : vector<1x40x32xf32> to vector<40x32xf32>
    %c2_47 = arith.constant 2 : index
    %c72_48 = arith.constant 72 : index
    %c0_49 = arith.constant 0 : index
    %77 = vector.load %arg4[%c2_47, %c72_48, %c0_49] : memref<3x80x32xf32, #tpu.memory_space<vmem>>, vector<1x1x32xf32>
    %78 = vector.shape_cast %77 : vector<1x1x32xf32> to vector<1x32xf32>
    %cst_50 = arith.constant dense<0.000000e+00> : vector<64x8xf32>
    %79 = tpu.matmul %15, %70, %cst_50 {dimension_numbers = #tpu.dot_dimension_numbers<[1], [0], [0], [1], [0, 0, 1, 1], [], []>} : vector<64x16xf32>, vector<16x8xf32>, vector<64x8xf32> -> vector<64x8xf32>
    %80 = vector.extract_strided_slice %79 {offsets = [0, 0], sizes = [32, 8], strides = [1, 1]} : vector<64x8xf32> to vector<32x8xf32>
    %81 = vector.extract_strided_slice %79 {offsets = [32, 0], sizes = [32, 8], strides = [1, 1]} : vector<64x8xf32> to vector<32x8xf32>
    %82 = tpu.concatenate %80, %81, %3 in 1 : vector<32x8xf32>, vector<32x8xf32>, vector<32x8xf32> -> vector<32x24xf32>
    %cst_51 = arith.constant dense<0.000000e+00> : vector<32x32xf32>
    %83 = tpu.matmul %82, %72, %cst_51 {dimension_numbers = #tpu.dot_dimension_numbers<[1], [0], [0], [1], [0, 0, 1, 1], [], []>} : vector<32x24xf32>, vector<24x32xf32>, vector<32x32xf32> -> vector<32x32xf32>
    %84 = vector.broadcast %74 : vector<1x32xf32> to vector<32x32xf32>
    %85 = arith.addf %83, %84 : vector<32x32xf32>
    %cst_52 = arith.constant 0.000000e+00 : f32
    %86 = vector.broadcast %cst_52 : f32 to vector<32x32xf32>
    %87 = arith.maximumf %85, %86 : vector<32x32xf32>
    %cst_53 = arith.constant dense<0.000000e+00> : vector<16x32xf32>
    %88 = tpu.matmul %20, %87, %cst_53 {dimension_numbers = #tpu.dot_dimension_numbers<[1], [0], [0], [1], [0, 0, 1, 1], [], []>} : vector<16x32xf32>, vector<32x32xf32>, vector<16x32xf32> -> vector<16x32xf32>
    %89 = tpu.concatenate %70, %88 in 1 : vector<16x8xf32>, vector<16x32xf32> -> vector<16x40xf32>
    %cst_54 = arith.constant dense<0.000000e+00> : vector<16x32xf32>
    %90 = tpu.matmul %89, %76, %cst_54 {dimension_numbers = #tpu.dot_dimension_numbers<[1], [0], [0], [1], [0, 0, 1, 1], [], []>} : vector<16x40xf32>, vector<40x32xf32>, vector<16x32xf32> -> vector<16x32xf32>
    %91 = vector.broadcast %78 : vector<1x32xf32> to vector<16x32xf32>
    %92 = arith.addf %90, %91 : vector<16x32xf32>
    %cst_55 = arith.constant 0.000000e+00 : f32
    %93 = vector.broadcast %cst_55 : f32 to vector<16x32xf32>
    %94 = arith.maximumf %92, %93 : vector<16x32xf32>
    %95 = vector.extract_strided_slice %94 {offsets = [0, 0], sizes = [16, 8], strides = [1, 1]} : vector<16x32xf32> to vector<16x8xf32>
    %96 = tpu.iota {dimensions = array<i32: 0>} : vector<2x16xi32>
    %97 = vector.broadcast %10 : vector<1x16xi32> to vector<2x16xi32>
    %98 = arith.cmpi eq, %96, %97 : vector<2x16xi32>
    %99 = arith.extui %98 : vector<2x16xi1> to vector<2x16xi32>
    %100 = arith.sitofp %99 : vector<2x16xi32> to vector<2x16xf32>
    %cst_56 = arith.constant dense<0.000000e+00> : vector<2xf32>
    %101 = vector.multi_reduction <add>, %100, %cst_56 [1] : vector<2x16xf32> to vector<2xf32>
    %102 = vector.shape_cast %101 : vector<2xf32> to vector<2x1xf32>
    %cst_57 = arith.constant 1.000000e+00 : f32
    %103 = vector.broadcast %cst_57 : f32 to vector<2x1xf32>
    %104 = arith.maximumf %102, %103 : vector<2x1xf32>
    %cst_58 = arith.constant 1.000000e+00 : f32
    %105 = vector.broadcast %cst_58 : f32 to vector<2x1xf32>
    %106 = arith.divf %105, %104 : vector<2x1xf32>
    %107 = vector.broadcast %106 : vector<2x1xf32> to vector<2x16xf32>
    %108 = arith.mulf %100, %107 : vector<2x16xf32>
    %cst_59 = arith.constant dense<0.000000e+00> : vector<2x8xf32>
    %109 = tpu.matmul %108, %95, %cst_59 {dimension_numbers = #tpu.dot_dimension_numbers<[1], [0], [0], [1], [0, 0, 1, 1], [], []>} : vector<2x16xf32>, vector<16x8xf32>, vector<2x8xf32> -> vector<2x8xf32>
    %c0_60 = arith.constant 0 : index
    %c0_61 = arith.constant 0 : index
    %110 = vector.load %arg5[%c0_60, %c0_61] : memref<288x128xf32, #tpu.memory_space<vmem>>, vector<8x128xf32>
    %cst_62 = arith.constant dense<0.000000e+00> : vector<2x128xf32>
    %111 = tpu.matmul %109, %110, %cst_62 {dimension_numbers = #tpu.dot_dimension_numbers<[1], [0], [0], [1], [0, 0, 1, 1], [], []>} : vector<2x8xf32>, vector<8x128xf32>, vector<2x128xf32> -> vector<2x128xf32>
    %c8 = arith.constant 8 : index
    %c0_63 = arith.constant 0 : index
    %112 = vector.load %arg5[%c8, %c0_63] : memref<288x128xf32, #tpu.memory_space<vmem>>, vector<1x128xf32>
    %113 = vector.broadcast %112 : vector<1x128xf32> to vector<2x128xf32>
    %114 = arith.addf %111, %113 : vector<2x128xf32>
    %c9 = arith.constant 9 : index
    %c0_64 = arith.constant 0 : index
    %115 = vector.load %arg5[%c9, %c0_64] : memref<288x128xf32, #tpu.memory_space<vmem>>, vector<1x128xf32>
    %c10 = arith.constant 10 : index
    %c0_65 = arith.constant 0 : index
    %116 = vector.load %arg5[%c10, %c0_65] : memref<288x128xf32, #tpu.memory_space<vmem>>, vector<1x128xf32>
    %cst_66 = arith.constant dense<0.000000e+00> : vector<128xf32>
    %117 = vector.multi_reduction <add>, %114, %cst_66 [0] : vector<2x128xf32> to vector<128xf32>
    %118 = vector.shape_cast %117 : vector<128xf32> to vector<1x128xf32>
    %cst_67 = arith.constant 2.000000e+00 : f32
    %119 = vector.broadcast %cst_67 : f32 to vector<1x128xf32>
    %120 = arith.divf %118, %119 : vector<1x128xf32>
    %121 = vector.broadcast %120 : vector<1x128xf32> to vector<2x128xf32>
    %122 = arith.subf %114, %121 : vector<2x128xf32>
    %123 = vector.broadcast %120 : vector<1x128xf32> to vector<2x128xf32>
    %124 = arith.subf %114, %123 : vector<2x128xf32>
    %125 = arith.mulf %122, %124 : vector<2x128xf32>
    %cst_68 = arith.constant dense<0.000000e+00> : vector<128xf32>
    %126 = vector.multi_reduction <add>, %125, %cst_68 [0] : vector<2x128xf32> to vector<128xf32>
    %127 = vector.shape_cast %126 : vector<128xf32> to vector<1x128xf32>
    %cst_69 = arith.constant 2.000000e+00 : f32
    %128 = vector.broadcast %cst_69 : f32 to vector<1x128xf32>
    %129 = arith.divf %127, %128 : vector<1x128xf32>
    %130 = vector.broadcast %120 : vector<1x128xf32> to vector<2x128xf32>
    %131 = arith.subf %114, %130 : vector<2x128xf32>
    %132 = vector.broadcast %115 : vector<1x128xf32> to vector<2x128xf32>
    %133 = arith.mulf %132, %131 : vector<2x128xf32>
    %cst_70 = arith.constant 9.99999974E-6 : f32
    %134 = vector.broadcast %cst_70 : f32 to vector<1x128xf32>
    %135 = arith.addf %129, %134 : vector<1x128xf32>
    %136 = math.rsqrt %135 : vector<1x128xf32>
    %137 = vector.broadcast %136 : vector<1x128xf32> to vector<2x128xf32>
    %138 = arith.mulf %133, %137 : vector<2x128xf32>
    %139 = vector.broadcast %116 : vector<1x128xf32> to vector<2x128xf32>
    %140 = arith.addf %138, %139 : vector<2x128xf32>
    %cst_71 = arith.constant 0.000000e+00 : f32
    %141 = vector.broadcast %cst_71 : f32 to vector<2x128xf32>
    %142 = arith.maximumf %140, %141 : vector<2x128xf32>
    %c16 = arith.constant 16 : index
    %c0_72 = arith.constant 0 : index
    %143 = vector.load %arg5[%c16, %c0_72] : memref<288x128xf32, #tpu.memory_space<vmem>>, vector<128x128xf32>
    %cst_73 = arith.constant dense<0.000000e+00> : vector<2x128xf32>
    %144 = tpu.matmul %142, %143, %cst_73 {dimension_numbers = #tpu.dot_dimension_numbers<[1], [0], [0], [1], [0, 0, 1, 1], [], []>} : vector<2x128xf32>, vector<128x128xf32>, vector<2x128xf32> -> vector<2x128xf32>
    %c144 = arith.constant 144 : index
    %c0_74 = arith.constant 0 : index
    %145 = vector.load %arg5[%c144, %c0_74] : memref<288x128xf32, #tpu.memory_space<vmem>>, vector<1x128xf32>
    %146 = vector.broadcast %145 : vector<1x128xf32> to vector<2x128xf32>
    %147 = arith.addf %144, %146 : vector<2x128xf32>
    %c145 = arith.constant 145 : index
    %c0_75 = arith.constant 0 : index
    %148 = vector.load %arg5[%c145, %c0_75] : memref<288x128xf32, #tpu.memory_space<vmem>>, vector<1x128xf32>
    %c146 = arith.constant 146 : index
    %c0_76 = arith.constant 0 : index
    %149 = vector.load %arg5[%c146, %c0_76] : memref<288x128xf32, #tpu.memory_space<vmem>>, vector<1x128xf32>
    %cst_77 = arith.constant dense<0.000000e+00> : vector<128xf32>
    %150 = vector.multi_reduction <add>, %147, %cst_77 [0] : vector<2x128xf32> to vector<128xf32>
    %151 = vector.shape_cast %150 : vector<128xf32> to vector<1x128xf32>
    %cst_78 = arith.constant 2.000000e+00 : f32
    %152 = vector.broadcast %cst_78 : f32 to vector<1x128xf32>
    %153 = arith.divf %151, %152 : vector<1x128xf32>
    %154 = vector.broadcast %153 : vector<1x128xf32> to vector<2x128xf32>
    %155 = arith.subf %147, %154 : vector<2x128xf32>
    %156 = vector.broadcast %153 : vector<1x128xf32> to vector<2x128xf32>
    %157 = arith.subf %147, %156 : vector<2x128xf32>
    %158 = arith.mulf %155, %157 : vector<2x128xf32>
    %cst_79 = arith.constant dense<0.000000e+00> : vector<128xf32>
    %159 = vector.multi_reduction <add>, %158, %cst_79 [0] : vector<2x128xf32> to vector<128xf32>
    %160 = vector.shape_cast %159 : vector<128xf32> to vector<1x128xf32>
    %cst_80 = arith.constant 2.000000e+00 : f32
    %161 = vector.broadcast %cst_80 : f32 to vector<1x128xf32>
    %162 = arith.divf %160, %161 : vector<1x128xf32>
    %163 = vector.broadcast %153 : vector<1x128xf32> to vector<2x128xf32>
    %164 = arith.subf %147, %163 : vector<2x128xf32>
    %165 = vector.broadcast %148 : vector<1x128xf32> to vector<2x128xf32>
    %166 = arith.mulf %165, %164 : vector<2x128xf32>
    %cst_81 = arith.constant 9.99999974E-6 : f32
    %167 = vector.broadcast %cst_81 : f32 to vector<1x128xf32>
    %168 = arith.addf %162, %167 : vector<1x128xf32>
    %169 = math.rsqrt %168 : vector<1x128xf32>
    %170 = vector.broadcast %169 : vector<1x128xf32> to vector<2x128xf32>
    %171 = arith.mulf %166, %170 : vector<2x128xf32>
    %172 = vector.broadcast %149 : vector<1x128xf32> to vector<2x128xf32>
    %173 = arith.addf %171, %172 : vector<2x128xf32>
    %cst_82 = arith.constant 0.000000e+00 : f32
    %174 = vector.broadcast %cst_82 : f32 to vector<2x128xf32>
    %175 = arith.maximumf %173, %174 : vector<2x128xf32>
    %c152 = arith.constant 152 : index
    %c0_83 = arith.constant 0 : index
    %176 = vector.load %arg5[%c152, %c0_83] : memref<288x128xf32, #tpu.memory_space<vmem>>, vector<128x128xf32>
    %cst_84 = arith.constant dense<0.000000e+00> : vector<2x128xf32>
    %177 = tpu.matmul %175, %176, %cst_84 {dimension_numbers = #tpu.dot_dimension_numbers<[1], [0], [0], [1], [0, 0, 1, 1], [], []>} : vector<2x128xf32>, vector<128x128xf32>, vector<2x128xf32> -> vector<2x128xf32>
    %c280 = arith.constant 280 : index
    %c0_85 = arith.constant 0 : index
    %178 = vector.load %arg5[%c280, %c0_85] : memref<288x128xf32, #tpu.memory_space<vmem>>, vector<1x128xf32>
    %179 = vector.broadcast %178 : vector<1x128xf32> to vector<2x128xf32>
    %180 = arith.addf %177, %179 : vector<2x128xf32>
    %c0_86 = arith.constant 0 : index
    %c0_87 = arith.constant 0 : index
    %c0_88 = arith.constant 0 : index
    %181 = vector.load %arg6[%c0_86, %c0_87, %c0_88] : memref<1x2x128xf32, #tpu.memory_space<vmem>>, vector<1x2x128xf32>
    %182 = vector.shape_cast %181 : vector<1x2x128xf32> to vector<2x128xf32>
    %183 = vector.shape_cast %180 : vector<2x128xf32> to vector<1x2x128xf32>
    tpu.vector_store %arg6[%c0_86, %c0_87, %c0_88], %183 {strides = array<i32>} : memref<1x2x128xf32, #tpu.memory_space<vmem>>, vector<1x2x128xf32>,
    return
  }
  func.func @transform_0(%arg0: i32) -> (i32, i32, i32) {
    %c0_i32 = arith.constant 0 : i32
    %c0_i32_0 = arith.constant 0 : i32
    %c0_i32_1 = arith.constant 0 : i32
    return %arg0, %c0_i32, %c0_i32_0 : i32, i32, i32
  }
  func.func @transform_1(%arg0: i32) -> (i32, i32, i32) {
    %c0_i32 = arith.constant 0 : i32
    %c0_i32_0 = arith.constant 0 : i32
    %c0_i32_1 = arith.constant 0 : i32
    return %arg0, %c0_i32, %c0_i32_0 : i32, i32, i32
  }
  func.func @transform_2(%arg0: i32) -> (i32, i32, i32) {
    %c0_i32 = arith.constant 0 : i32
    %c0_i32_0 = arith.constant 0 : i32
    %c0_i32_1 = arith.constant 0 : i32
    return %arg0, %c0_i32, %c0_i32_0 : i32, i32, i32
  }
  func.func @transform_3(%arg0: i32) -> (i32, i32, i32) {
    %c0_i32 = arith.constant 0 : i32
    %c0_i32_0 = arith.constant 0 : i32
    %c0_i32_1 = arith.constant 0 : i32
    %c0_i32_2 = arith.constant 0 : i32
    return %c0_i32, %c0_i32_0, %c0_i32_1 : i32, i32, i32
  }
  func.func @transform_4(%arg0: i32) -> (i32, i32) {
    %c0_i32 = arith.constant 0 : i32
    %c0_i32_0 = arith.constant 0 : i32
    %c0_i32_1 = arith.constant 0 : i32
    return %c0_i32, %c0_i32_0 : i32, i32
  }
  func.func @transform_5(%arg0: i32) -> (i32, i32, i32) {
    %c0_i32 = arith.constant 0 : i32
    %c0_i32_0 = arith.constant 0 : i32
    %c0_i32_1 = arith.constant 0 : i32
    return %arg0, %c0_i32, %c0_i32_0 : i32, i32, i32
  }
}

</mosaic_0001>

<bundles_post_ra>
// kernel: pmhci_forward.1
= control target key start
LH: loop header
LB: loop body
LE: loop exit
PB: predicated region body
PF: predicated region fallthrough
CT: control target
= control target key end

     0   :  { %s2686_s18 = smov 0   ;;  %s3211_s0 = inlined_call_operand.vmem [shape: s32[8,40,128], index: 0, kind: input, shape index: {}]   ;;  %s3212_s1 = inlined_call_operand.vmem [shape: f32[8,16,8], index: 1, kind: input, shape index: {}]   ;;  %s3213_s2 = inlined_call_operand.vmem [shape: f32[8,32,8], index: 2, kind: input, shape index: {}]   ;;  %s3214_s3 = inlined_call_operand.vmem [shape: f32[3,80,32], index: 3, kind: input, shape index: {}]   ;;  %s3215_s4 = inlined_call_operand.vmem [shape: f32[288,128], index: 4, kind: input, shape index: {}]   ;;  %s3216_s5 = inlined_call_operand.vmem [shape: f32[8,2,128], index: 5, kind: output, shape index: {}]  }
   0x1 LB: > { %s2143_s19 = sadd.s32 4294967295, %s2648_s18   ;;  %p2147_p0 = scmp.ge.s32.totalorder %s2648_s18, 1  ;;  %s2648_s18 = sphi %s2686_s18, %s15_s18  }
   0x2   : > { %p207_p1 = scmp.lt.s32.totalorder %s2648_s18, 9 }
   0x4   : > { %p208_p2 = pnand %p2147_p0, %p207_p1 }
   0x5   : > { %p244_p3 = scmp.lt.s32.totalorder (!%p208_p2), %s2143_s19, 7  ;;  %s2651_s28 = smov (!%p208_p2), 127  }
   0x6   : > { %211 = sbr.rel (%p208_p2) target bundleno = 4275 (0x10b3), region = 40  ;;  %s2653_s8 = smov (!%p208_p2), 16  }
   0x7   : > { %s2654_s15 = smov (!%p208_p2), 8  }
   0xb   : > { %v2650_v0 = vmov 0   ;;  %s3218_s19 = smov (!%p244_p3, %s2143_s19), 7  ;;  %v282_v11 = vlaneseq  ;;  %vm355_vm0 = vcmask 130048   ;;  %v2652_v15 = vmov 0.0   ;;  %v347_v32 = vld [vmem:[%s3214_s3 + $0x10] sm:$0xff]  ;;  %v346_v34 = vld [vmem:[%s3214_s3 + $0x8] sm:$0xff] }
   0xc   : > { %2635 = vset.pattern.permute.xlu1 %v2650_v0  ;;  %2634 = vset.pattern.permute.xlu0 %v2650_v0  ;;  %s2619_s20 = smul.u32 40, %s3218_s19  ;;  %s2250_s21 = sshll.u32 %s3218_s19, 4  ;;  %v345_v36 = vld [vmem:[%s3214_s3] sm:$0xff]  ;;  %vm517_vm9 = vcmask 64512   ;;  %vm530_vm10 = vcmask 195584   ;;  %vm632_vm12 = vcmask 261120  }
   0xd   : > { %s253_s24 = scalar_lea.vmem %s3212_s1, %s2250_s21  ;;  %v283_v12 = vand.u32 127, %v282_v11  ;;  %s2251_s29 = sshll.u32 %s3218_s19, 5  ;;  %2397 = vmatprep.subr.mxu1 %v347_v32  ;;  %v2811_v61 = vshrl.u32 %v282_v11, 7  ;;  %vm728_vm14 = vcmask 326656  }
   0xe   : > { %s2704_s27 = scalar_lea.vmem %s3211_s0, %s2619_s20  ;;  %v2706_v1 = vld [vmem:[%s253_s24 + $0x8] sm:$0xff]  ;;  %v2714_v6 = vld [vmem:[%s253_s24] sm:$0xff]  ;;  %s2743_s7 = scalar_lea.vmem %s3213_s2, %s2251_s29  ;;  %2398 = vmatpush3.msra.mxu1 %v347_v32 }
   0xf   : > { %v269_v2 = vld [vmem:[%s2704_s27] sm:$0xff]  ;;  %v271_v3 = vld [vmem:[%s2704_s27 + $0x10] sm:$0xff]  ;;  %2381 = vmatprep.subr.mxu0 %v2706_v1  ;;  %v270_v4 = vld [vmem:[%s2704_s27 + $0x8] sm:$0xff]  ;;  %2399 = vmatprep.subr.mxu1 %v346_v34  ;;  %v337_v62 = vsub.s32 0, %v2811_v61  ;;  %s2153_s11 = sshll.u32 %s3218_s19, 1 }
  0x10   : > { %274 = vrot.lane.b32.xlu0 %v269_v2, %s2651_s28  ;;  %278 = vrot.lane.b32.xlu1 %v271_v3, %s2651_s28  ;;  %v272_v5 = vld [vmem:[%s2704_s27 + $0x18] sm:$0xff]  ;;  %v266_v22 = vld [vmem:[%s2743_s7 + $0x8] sm:$0xff]  ;;  %s262_s17 = scalar_lea.vmem %s3216_s5, %s2153_s11 }
  0x11   : > { %2382 = vmatpush3.msra.mxu0 %v2706_v1  ;;  %v265_v23 = vld [vmem:[%s2743_s7] sm:$0xff]  ;;  %2400 = vmatpush3.msra.mxu1 %v346_v34  ;;  %v268_v43 = vld [vmem:[%s2743_s7 + $0x18] sm:$0xff]  ;;  %v267_v44 = vld [vmem:[%s2743_s7 + $0x10] sm:$0xff] }
  0x12   : > { %2383 = vmatprep.subr.mxu0 %v2714_v6  ;;  %2401 = vmatprep.subr.mxu1 %v345_v36  ;;  %v2815_v63 = vld [vmem:[%s2704_s27 + $0x20] sm:$0xff] }
  0x13   : > { %2384 = vmatpush3.msra.mxu0 %v2714_v6  ;;  %2402 = vmatpush3.msra.mxu1 %v345_v36  ;;  %v338_v0 = vrot.slane %v2815_v63, %v337_v62  ;;  %v349_v32 = vld [vmem:[%s3214_s3 + $0x20] sm:$0xff] }
  0x14   : > { %276 = vrot.lane.b32.xlu0 %v270_v4, %s2651_s28  ;;  %280 = vrot.lane.b32.xlu1 %v272_v5, %s2651_s28 }
  0x15   : > { %vm339_vm11 = vcmp.eq.s32.totalorder %v2811_v61, %v338_v0 }
  0x18   : > { %288 = vperm.xlu1 %2635, %v270_v4   ;;  %285 = vperm.xlu0 %2634, %v269_v2   ;;  %v2820_v2 = vsel %vm339_vm11, 1.0, %v2652_v15 }
  0x1c   : > { %291 = vperm.xlu1 %2635, %v271_v3   ;;  %294 = vperm.xlu0 %2634, %v272_v5   ;;  %v2172_v5 = vld [vmem:[%s3214_s3 + $0x18] ss:$0 sm:$0xff] }
  0x82   : > { %v275_v7 = vpop.permute.xlu0 %274  ;;  %v279_v8 = vpop.permute.xlu1 %278 }
  0x83   : > { %297 = vperm.xlu1 %2635, %v275_v7  }
  0x86   : > { %v277_v9 = vpop.permute.xlu0 %276  ;;  %v281_v10 = vpop.permute.xlu1 %280 }
  0x87   : > { %303 = vperm.xlu1 %2635, %v279_v8   ;;  %300 = vperm.xlu0 %2634, %v277_v9  }
  0x8b   : > { %306 = vperm.xlu0 %2634, %v281_v10   ;;  %505 = vrot.lane.b32.xlu1 %v265_v23, %s2653_s8 }
  0x8f   : > { %507 = vrot.lane.b32.xlu0 %v266_v22, %s2653_s8 }
  0x93   : > { %v289_v13 = vpop.permute.xlu1 %288  ;;  %v286_v14 = vpop.permute.xlu0 %285 }
  0x94   : > { %vm309_vm1 = vcmp.eq.s32.totalorder %v283_v12, %v289_v13  ;;  %vm308_vm2 = vcmp.eq.s32.totalorder %v283_v12, %v286_v14  ;;  %v334_v13 = vadd.s32 8, %v2811_v61 }
  0x95   : > { %v2720_v16 = vsel %vm309_vm1, 1.0, %v2652_v15  ;;  %v2723_v17 = vsel %vm308_vm2, 1.0, %v2652_v15  ;;  %vm1653_vm1 = vcmask 123904   ;;  %vm2655_vm2 = vmmov 0  }
  0x96   : > { %2385 = vmatprep.mubr.msk.f32.mxu0 %vm355_vm0, %v2723_v17  ;;  %vm340_vm13 = vcmp.eq.s32.totalorder %v334_v13, %v338_v0 }
  0x97   : > { %v292_v18 = vpop.permute.xlu1 %291  ;;  %2386 = vmatmul.mubr.msk.f32.vlgmr.msra.gmra.mxu0 %vm355_vm0, %v2720_v16  ;;  %v295_v19 = vpop.permute.xlu0 %294  ;;  %v2829_v23 = vsel %vm340_vm13, 1.0, %v2652_v15 }
  0x98   : > { %vm310_vm3 = vcmp.eq.s32.totalorder %v283_v12, %v292_v18  ;;  %vm311_vm4 = vcmp.eq.s32.totalorder %v283_v12, %v295_v19 }
  0x99   : > { %v2730_v20 = vsel %vm310_vm3, 1.0, %v2652_v15  ;;  %v2733_v21 = vsel %vm311_vm4, 1.0, %v2652_v15 }
  0x9a   : > { %2388 = vmatprep.mubr.msk.f32.mxu0 %vm355_vm0, %v2730_v20 }
  0x9b   : > { %2389 = vmatmul.mubr.msk.f32.gmra.mxu0 %vm355_vm0, %v2733_v21 }
  0xfe   : > { %v298_v24 = vpop.permute.xlu1 %297 }
  0xff   : > { %vm312_vm5 = vcmp.eq.s32.totalorder %v283_v12, %v298_v24  ;;  %v353_v24 = vld [vmem:[%s3214_s3 + $0x40] sm:$0xff] }
 0x100   : > { %v2750_v25 = vsel %vm312_vm5, 1.0, %v2652_v15  ;;  %2420 = vmatprep.subr.mxu0 %v353_v24 }
 0x101   : > { %2391 = vmatprep.mubr.msk.f32.mxu0 %vm355_vm0, %v2750_v25  ;;  %2421 = vmatpush3.msra.mxu0 %v353_v24 }
 0x102   : > { %v304_v26 = vpop.permute.xlu1 %303  ;;  %v301_v27 = vpop.permute.xlu0 %300 }
 0x103   : > { %vm314_vm6 = vcmp.eq.s32.totalorder %v283_v12, %v304_v26  ;;  %vm313_vm7 = vcmp.eq.s32.totalorder %v283_v12, %v301_v27  ;;  %v352_v26 = vld [vmem:[%s3214_s3 + $0x38] sm:$0xff]  ;;  %v351_v27 = vld [vmem:[%s3214_s3 + $0x30] sm:$0xff] }
 0x104   : > { %v2755_v28 = vsel %vm314_vm6, 1.0, %v2652_v15  ;;  %v2758_v29 = vsel %vm313_vm7, 1.0, %v2652_v15  ;;  %2422 = vmatprep.subr.mxu0 %v352_v26 }
 0x105   : > { %2392 = vmatmul.mubr.msk.f32.gmra.mxu0 %vm355_vm0, %v2758_v29 }
 0x106   : > { %2394 = vmatprep.mubr.msk.f32.mxu0 %vm355_vm0, %v2755_v28  ;;  %v307_v30 = vpop.permute.xlu0 %306  ;;  %v2788_v46 = vpop.permute.xlu1 %505  ;;  %2423 = vmatpush3.msra.mxu0 %v352_v26 }
 0x107   : > { %vm315_vm8 = vcmp.eq.s32.totalorder %v283_v12, %v307_v30  ;;  %v350_v30 = vld [vmem:[%s3214_s3 + $0x28] sm:$0xff]  ;;  %2424 = vmatprep.subr.mxu0 %v351_v27 }
 0x108   : > { %v2765_v31 = vsel %vm315_vm8, 1.0, %v2652_v15  ;;  %2425 = vmatpush3.msra.mxu0 %v351_v27 }
 0x109   : > { %2395 = vmatmul.mubr.msk.f32.gmra.mxu0 %vm355_vm0, %v2765_v31  ;;  %2426 = vmatprep.subr.mxu0 %v350_v30 }
 0x10a   : > { %v2786_v45 = vpop.permute.xlu0 %507  ;;  %2427 = vmatpush3.msra.mxu0 %v350_v30 }
 0x10b   : > { %2428 = vmatprep.subr.mxu0 %v349_v32 }
 0x10c   : > { %2429 = vmatpush3.msra.mxu0 %v349_v32 }
 0x157   : > { %v2387_v33 = vpop.f32.mrf.mxu0 }
 0x159   : > { %v446_v35 = vpop.f32.mrf.mxu0 }
 0x15b   : > { %v2390_v37 = vpop.f32.mrf.mxu0 }
 0x15d   : > { %v456_v38 = vpop.f32.mrf.mxu0 }
 0x1c5   : > { %v2393_v39 = vpop.f32.mrf.mxu0 }
 0x1c6   : > { %491 = vrot.lane.b32.xlu0 %v2393_v39, %s2654_s15  ;;  %v2179_v39 = vld [vmem:[%s3214_s3 + $0x48] ss:$0 sm:$0xff] }
 0x1c7   : > { %v466_v40 = vpop.f32.mrf.mxu0 }
 0x1c8   : > { %489 = vrot.lane.b32.xlu1 %v466_v40, %s2654_s15 }
 0x1c9   : > { %v2396_v41 = vpop.f32.mrf.mxu0 }
 0x1ca   : > { %495 = vrot.lane.b32.xlu0 %v2396_v41, %s2654_s15 }
 0x1cb   : > { %v476_v42 = vpop.f32.mrf.mxu0 }
 0x1cc   : > { %493 = vrot.lane.b32.xlu1 %v476_v42, %s2654_s15 }
 0x1ce   : > { %511 = vrot.lane.b32.xlu0 %v268_v43, %s2653_s8 }
 0x1d0   : > { %509 = vrot.lane.b32.xlu1 %v267_v44, %s2653_s8 }
 0x238   : > { %v492_v47 = vpop.permute.xlu0 %491 }
 0x239   : > { %v519_v48 = vsel %vm517_vm9, %v2387_v33, %v492_v47 }
 0x23a   : > { %v490_v49 = vpop.permute.xlu1 %489  ;;  %v523_v53 = vsel %vm355_vm0, %v519_v48, %v2786_v45  ;;  %v2182_v48 = vld [vmem:[%s3214_s3 + $0x50] sm:$0xff] }
 0x23b   : > { %v518_v50 = vsel %vm517_vm9, %v446_v35, %v490_v49 }
 0x23c   : > { %v496_v51 = vpop.permute.xlu0 %495  ;;  %v522_v52 = vsel %vm355_vm0, %v518_v50, %v2788_v46 }
 0x23d   : > { %2403 = vmatprep.mubr.msk.f32.mxu1 %vm530_vm10, %v522_v52  ;;  %v521_v58 = vsel %vm517_vm9, %v2390_v37, %v496_v51 }
 0x23e   : > { %v494_v54 = vpop.permute.xlu1 %493  ;;  %2404 = vmatmul.mubr.msk.f32.vlgmr.msra.gmra.mxu1 %vm530_vm10, %v523_v53 }
 0x23f   : > { %v520_v56 = vsel %vm517_vm9, %v456_v38, %v494_v54 }
 0x240   : > { %v2798_v55 = vpop.permute.xlu0 %511 }
 0x241   : > { %v525_v60 = vsel %vm355_vm0, %v521_v58, %v2798_v55 }
 0x242   : > { %v2801_v57 = vpop.permute.xlu1 %509 }
 0x243   : > { %v524_v59 = vsel %vm355_vm0, %v520_v56, %v2801_v57 }
 0x244   : > { %2406 = vmatprep.mubr.msk.f32.mxu1 %vm530_vm10, %v524_v59 }
 0x245   : > { %2407 = vmatmul.mubr.msk.f32.gmra.mxu1 %vm530_vm10, %v525_v60 }
 0x246   : > { %2417 = vmatprep.mubr.msk.f32.mxu1 %vm632_vm12, %v2820_v2 }
 0x2fe   : > { %v2405_v3 = vpop.f32.mrf.mxu1 }
 0x2ff   : > { %v615_v10 = vadd.f32 %v2405_v3, %v2172_v5 }
 0x300   : > { %v609_v4 = vpop.f32.mrf.mxu1 }
 0x301   : > { %v610_v14 = vadd.f32 %v2172_v5, %v609_v4  ;;  %v629_v19 = vmax.f32 %v615_v10, 0.0 }
 0x303   : > { %v628_v22 = vmax.f32 %v610_v14, 0.0  ;;  %v2200_v14 = vld [vmem:[%s3214_s3 + $0x68] ss:$0 sm:$0xff] }
 0x305   : > { %v2408_v7 = vpop.f32.mrf.mxu1 }
 0x306   : > { %v625_v8 = vadd.f32 %v2408_v7, %v2172_v5 }
 0x307   : > { %v619_v9 = vpop.f32.mrf.mxu1 }
 0x308   : > { %v631_v11 = vmax.f32 %v625_v8, 0.0  ;;  %v620_v12 = vadd.f32 %v2172_v5, %v619_v9 }
 0x30a   : > { %v630_v18 = vmax.f32 %v620_v12, 0.0  ;;  %2409 = vmatprep.subr.mxu1 %v631_v11 }
 0x30b   : > { %2410 = vmatpush3.msra.mxu1 %v631_v11 }
 0x30c   : > { %2411 = vmatprep.subr.mxu1 %v630_v18 }
 0x30d   : > { %2412 = vmatpush3.msra.mxu1 %v630_v18 }
 0x30e   : > { %2413 = vmatprep.subr.mxu1 %v629_v19 }
 0x30f   : > { %2414 = vmatpush3.msra.mxu1 %v629_v19 }
 0x310   : > { %2415 = vmatprep.subr.mxu1 %v628_v22 }
 0x311   : > { %2416 = vmatpush3.msra.mxu1 %v628_v22 }
 0x312   : > { %2418 = vmatmul.mubr.msk.f32.vlgmr.msra.gmra.mxu1 %vm632_vm12, %v2829_v23 }
 0x313   : > { %2437 = vmatprep.mubr.msk.f32.mxu1 %vm355_vm0, %v2723_v17 }
 0x3d2   : > { %v2419_v33 = vpop.f32.mrf.mxu1 }
 0x3d3   : > { %718 = vrot.lane.b32.xlu0 %v2419_v33, %s2654_s15 }
 0x3d4   : > { %v705_v34 = vpop.f32.mrf.mxu1 }
 0x3d5   : > { %716 = vrot.lane.b32.xlu1 %v705_v34, %s2654_s15 }
 0x445   : > { %v719_v35 = vpop.permute.xlu0 %718 }
 0x446   : > { %v723_v38 = vsel %vm517_vm9, %v2706_v1, %v719_v35  ;;  %v2184_v1 = vld [vmem:[%s3214_s3 + $0x60] sm:$0xff]  ;;  %v2190_v35 = vld [vmem:[%s3214_s3 + $0x90] sm:$0xff] }
 0x447   : > { %v717_v36 = vpop.permute.xlu1 %716  ;;  %2449 = vmatprep.subr.mxu0 %v2184_v1 }
 0x448   : > { %v722_v37 = vsel %vm517_vm9, %v2714_v6, %v717_v36  ;;  %v2183_v6 = vld [vmem:[%s3214_s3 + $0x58] sm:$0xff]  ;;  %v2189_v36 = vld [vmem:[%s3214_s3 + $0x88] sm:$0xff] }
 0x449   : > { %2430 = vmatprep.mubr.msk.f32.mxu0 %vm728_vm14, %v722_v37  ;;  %v2188_v37 = vld [vmem:[%s3214_s3 + $0x80] sm:$0xff] }
 0x44a   : > { %2431 = vmatmul.mubr.msk.f32.vlgmr.msra.gmra.mxu0 %vm728_vm14, %v723_v38  ;;  %v2186_v38 = vld [vmem:[%s3214_s3 + $0x70] sm:$0xff] }
 0x44b   : > { %2450 = vmatpush3.msra.mxu0 %v2184_v1 }
 0x44c   : > { %2451 = vmatprep.subr.mxu0 %v2183_v6 }
 0x44d   : > { %2452 = vmatpush3.msra.mxu0 %v2183_v6  ;;  %v2207_v6 = vld [vmem:[%s3214_s3 + $0x98] ss:$0 sm:$0xff] }
 0x44e   : > { %2453 = vmatprep.subr.mxu0 %v2182_v48 }
 0x44f   : > { %2454 = vmatpush3.msra.mxu0 %v2182_v48 }
 0x50a   : > { %v2432_v40 = vpop.f32.mrf.mxu0 }
 0x50b   : > { %v807_v41 = vadd.f32 %v2432_v40, %v2179_v39 }
 0x50c   : > { %v801_v42 = vpop.f32.mrf.mxu0 }
 0x50d   : > { %v2861_v43 = vmax.f32 %v807_v41, 0.0  ;;  %v802_v44 = vadd.f32 %v2179_v39, %v801_v42 }
 0x50f   : > { %v2863_v47 = vmax.f32 %v802_v44, 0.0  ;;  %2433 = vmatprep.subr.mxu1 %v2861_v43 }
 0x510   : > { %2434 = vmatpush3.msra.mxu1 %v2861_v43 }
 0x511   : > { %2435 = vmatprep.subr.mxu1 %v2863_v47 }
 0x512   : > { %2436 = vmatpush3.msra.mxu1 %v2863_v47 }
 0x513   : > { %2438 = vmatmul.mubr.msk.f32.vlgmr.msra.gmra.mxu1 %vm355_vm0, %v2720_v16  ;;  %2472 = vmatprep.subr.mxu1 %v2190_v35 }
 0x514   : > { %2440 = vmatprep.mubr.msk.f32.mxu1 %vm355_vm0, %v2730_v20  ;;  %2473 = vmatpush3.msra.mxu1 %v2190_v35  ;;  %v1648_v35 = vsub.s32 1, %v2811_v61 }
 0x515   : > { %2474 = vmatprep.subr.mxu1 %v2189_v36 }
 0x516   : > { %2475 = vmatpush3.msra.mxu1 %v2189_v36  ;;  %v1649_v36 = vrot.slane %v2815_v63, %v1648_v35 }
 0x517   : > { %2441 = vmatmul.mubr.msk.f32.gmra.mxu1 %vm355_vm0, %v2733_v21  ;;  %2476 = vmatprep.subr.mxu1 %v2188_v37 }
 0x518   : > { %2443 = vmatprep.mubr.msk.f32.mxu1 %vm355_vm0, %v2750_v25  ;;  %2477 = vmatpush3.msra.mxu1 %v2188_v37  ;;  %vm1650_vm15 = vcmp.eq.s32.totalorder %v2811_v61, %v1649_v36  ;;  %v2243_v36 = vld [vmem:[%s3215_s4 + $0xa] ss:$0 sm:$0xff] }
 0x519   : > { %v2238_v37 = vsel %vm1650_vm15, 1.0, %v2652_v15 }
 0x51b   : > { %2444 = vmatmul.mubr.msk.f32.gmra.mxu1 %vm355_vm0, %v2758_v29 }
 0x51c   : > { %2446 = vmatprep.mubr.msk.f32.mxu1 %vm355_vm0, %v2755_v28 }
 0x51f   : > { %2447 = vmatmul.mubr.msk.f32.gmra.mxu1 %vm355_vm0, %v2765_v31 }
 0x5d3   : > { %v2439_v49 = vpop.f32.mrf.mxu1 }
 0x5d5   : > { %v889_v50 = vpop.f32.mrf.mxu1 }
 0x5d7   : > { %v2442_v51 = vpop.f32.mrf.mxu1 }
 0x5d9   : > { %v899_v52 = vpop.f32.mrf.mxu1 }
 0x5db   : > { %v2445_v53 = vpop.f32.mrf.mxu1 }
 0x5dc   : > { %934 = vrot.lane.b32.xlu0 %v2445_v53, %s2654_s15 }
 0x5dd   : > { %v909_v54 = vpop.f32.mrf.mxu1 }
 0x5de   : > { %932 = vrot.lane.b32.xlu1 %v909_v54, %s2654_s15 }
 0x5df   : > { %v2448_v56 = vpop.f32.mrf.mxu1 }
 0x5e0   : > { %938 = vrot.lane.b32.xlu0 %v2448_v56, %s2654_s15 }
 0x5e1   : > { %v919_v58 = vpop.f32.mrf.mxu1 }
 0x5e2   : > { %936 = vrot.lane.b32.xlu1 %v919_v58, %s2654_s15 }
 0x64e   : > { %v935_v59 = vpop.permute.xlu0 %934 }
 0x64f   : > { %v945_v60 = vsel %vm517_vm9, %v2439_v49, %v935_v59 }
 0x650   : > { %v933_v62 = vpop.permute.xlu1 %932  ;;  %v949_v5 = vsel %vm355_vm0, %v945_v60, %v2786_v45 }
 0x651   : > { %v944_v0 = vsel %vm517_vm9, %v889_v50, %v933_v62 }
 0x652   : > { %v939_v3 = vpop.permute.xlu0 %938  ;;  %v948_v4 = vsel %vm355_vm0, %v944_v0, %v2788_v46 }
 0x653   : > { %2455 = vmatprep.mubr.msk.f32.mxu0 %vm530_vm10, %v948_v4  ;;  %v947_v7 = vsel %vm517_vm9, %v2442_v51, %v939_v3 }
 0x654   : > { %2456 = vmatmul.mubr.msk.f32.vlgmr.msra.gmra.mxu0 %vm530_vm10, %v949_v5  ;;  %v937_v8 = vpop.permute.xlu1 %936  ;;  %v951_v11 = vsel %vm355_vm0, %v947_v7, %v2798_v55 }
 0x655   : > { %v946_v9 = vsel %vm517_vm9, %v899_v52, %v937_v8 }
 0x656   : > { %v950_v10 = vsel %vm355_vm0, %v946_v9, %v2801_v57 }
 0x657   : > { %2458 = vmatprep.mubr.msk.f32.mxu0 %vm530_vm10, %v950_v10 }
 0x658   : > { %2459 = vmatmul.mubr.msk.f32.gmra.mxu0 %vm530_vm10, %v951_v11  ;;  %v2228_v11 = vld [vmem:[%s3214_s3 + $0xb8] ss:$0 sm:$0xff] }
 0x659   : > { %2469 = vmatprep.mubr.msk.f32.mxu0 %vm632_vm12, %v2820_v2 }
 0x714   : > { %v2457_v12 = vpop.f32.mrf.mxu0 }
 0x715   : > { %v1040_v24 = vadd.f32 %v2457_v12, %v2200_v14 }
 0x716   : > { %v1034_v13 = vpop.f32.mrf.mxu0 }
 0x717   : > { %v1035_v30 = vadd.f32 %v2200_v14, %v1034_v13  ;;  %v1054_v33 = vmax.f32 %v1040_v24, 0.0 }
 0x718   : > { %v2460_v18 = vpop.f32.mrf.mxu0 }
 0x719   : > { %v1050_v19 = vadd.f32 %v2460_v18, %v2200_v14  ;;  %v1053_v34 = vmax.f32 %v1035_v30, 0.0  ;;  %v2216_v30 = vld [vmem:[%s3214_s3 + $0xd0] sm:$0xff] }
 0x71a   : > { %v1044_v22 = vpop.f32.mrf.mxu0 }
 0x71b   : > { %v1056_v26 = vmax.f32 %v1050_v19, 0.0  ;;  %v1045_v27 = vadd.f32 %v2200_v14, %v1044_v22 }
 0x71d   : > { %v1055_v32 = vmax.f32 %v1045_v27, 0.0  ;;  %2461 = vmatprep.subr.mxu0 %v1056_v26  ;;  %v2217_v27 = vld [vmem:[%s3214_s3 + $0xd8] sm:$0xff] }
 0x71e   : > { %2462 = vmatpush3.msra.mxu0 %v1056_v26  ;;  %v2218_v26 = vld [vmem:[%s3214_s3 + $0xe0] sm:$0xff] }
 0x71f   : > { %2463 = vmatprep.subr.mxu0 %v1055_v32 }
 0x720   : > { %2464 = vmatpush3.msra.mxu0 %v1055_v32  ;;  %v2214_v32 = vld [vmem:[%s3214_s3 + $0xc0] sm:$0xff] }
 0x721   : > { %2465 = vmatprep.subr.mxu0 %v1054_v33 }
 0x722   : > { %2466 = vmatpush3.msra.mxu0 %v1054_v33 }
 0x723   : > { %2467 = vmatprep.subr.mxu0 %v1053_v34 }
 0x724   : > { %2468 = vmatpush3.msra.mxu0 %v1053_v34 }
 0x725   : > { %2470 = vmatmul.mubr.msk.f32.vlgmr.msra.gmra.mxu0 %vm632_vm12, %v2829_v23 }
 0x726   : > { %2489 = vmatprep.mubr.msk.f32.mxu0 %vm355_vm0, %v2723_v17  ;;  %v2187_v17 = vld [vmem:[%s3214_s3 + $0x78] sm:$0xff] }
 0x727   : > { %2478 = vmatprep.subr.mxu1 %v2187_v17 }
 0x728   : > { %2479 = vmatpush3.msra.mxu1 %v2187_v17  ;;  %v1654_v17 = vsel %vm1653_vm1, %v2238_v37, 0.0 }
 0x729   : > { %2480 = vmatprep.subr.mxu1 %v2186_v38 }
 0x72a   : > { %2481 = vmatpush3.msra.mxu1 %v2186_v38 }
 0x7e5   : > { %v2471_v39 = vpop.f32.mrf.mxu0 }
 0x7e6   : > { %1136 = vrot.lane.b32.xlu0 %v2471_v39, %s2654_s15 }
 0x7e7   : > { %v1123_v40 = vpop.f32.mrf.mxu0 }
 0x7e8   : > { %1134 = vrot.lane.b32.xlu1 %v1123_v40, %s2654_s15 }
 0x858   : > { %v1137_v41 = vpop.permute.xlu0 %1136 }
 0x859   : > { %v1141_v1 = vsel %vm517_vm9, %v2861_v43, %v1137_v41 }
 0x85a   : > { %v1135_v42 = vpop.permute.xlu1 %1134 }
 0x85b   : > { %v1140_v44 = vsel %vm517_vm9, %v2863_v47, %v1135_v42  ;;  %v2235_v42 = vld [vmem:[%s3214_s3 + $0xe8] ss:$0 sm:$0xff] }
 0x85c   : > { %2482 = vmatprep.mubr.msk.f32.mxu1 %vm728_vm14, %v1140_v44 }
 0x85d   : > { %2483 = vmatmul.mubr.msk.f32.vlgmr.msra.gmra.mxu1 %vm728_vm14, %v1141_v1 }
 0x91d   : > { %v2484_v48 = vpop.f32.mrf.mxu1 }
 0x91e   : > { %v1224_v49 = vadd.f32 %v2484_v48, %v2207_v6 }
 0x91f   : > { %v1218_v50 = vpop.f32.mrf.mxu1 }
 0x920   : > { %v2947_v51 = vmax.f32 %v1224_v49, 0.0  ;;  %v1219_v52 = vadd.f32 %v2207_v6, %v1218_v50 }
 0x922   : > { %v2949_v53 = vmax.f32 %v1219_v52, 0.0  ;;  %2485 = vmatprep.subr.mxu0 %v2947_v51 }
 0x923   : > { %2486 = vmatpush3.msra.mxu0 %v2947_v51 }
 0x924   : > { %2487 = vmatprep.subr.mxu0 %v2949_v53 }
 0x925   : > { %2488 = vmatpush3.msra.mxu0 %v2949_v53 }
 0x926   : > { %2490 = vmatmul.mubr.msk.f32.vlgmr.msra.gmra.mxu0 %vm355_vm0, %v2720_v16  ;;  %v2212_v16 = vld [vmem:[%s3214_s3 + $0xb0] sm:$0xff]  ;;  %2524 = vmatprep.subr.mxu0 %v2218_v26 }
 0x927   : > { %2492 = vmatprep.mubr.msk.f32.mxu0 %vm355_vm0, %v2730_v20  ;;  %2501 = vmatprep.subr.mxu1 %v2212_v16  ;;  %v2211_v20 = vld [vmem:[%s3214_s3 + $0xa8] sm:$0xff] }
 0x928   : > { %2502 = vmatpush3.msra.mxu1 %v2212_v16  ;;  %2525 = vmatpush3.msra.mxu0 %v2218_v26 }
 0x929   : > { %2503 = vmatprep.subr.mxu1 %v2211_v20  ;;  %2526 = vmatprep.subr.mxu0 %v2217_v27 }
 0x92a   : > { %2493 = vmatmul.mubr.msk.f32.gmra.mxu0 %vm355_vm0, %v2733_v21  ;;  %2504 = vmatpush3.msra.mxu1 %v2211_v20  ;;  %v2210_v21 = vld [vmem:[%s3214_s3 + $0xa0] sm:$0xff] }
 0x92b   : > { %2495 = vmatprep.mubr.msk.f32.mxu0 %vm355_vm0, %v2750_v25  ;;  %2505 = vmatprep.subr.mxu1 %v2210_v21 }
 0x92c   : > { %2506 = vmatpush3.msra.mxu1 %v2210_v21  ;;  %2527 = vmatpush3.msra.mxu0 %v2217_v27  ;;  %v1864_v21 = vld [vmem:[%s3215_s4 + $0x88] sm:$0xff] }
 0x92d   : > { %2528 = vmatprep.subr.mxu0 %v2216_v30 }
 0x92e   : > { %2496 = vmatmul.mubr.msk.f32.gmra.mxu0 %vm355_vm0, %v2758_v29 }
 0x92f   : > { %2498 = vmatprep.mubr.msk.f32.mxu0 %vm355_vm0, %v2755_v28  ;;  %2529 = vmatpush3.msra.mxu0 %v2216_v30 }
 0x932   : > { %2499 = vmatmul.mubr.msk.f32.gmra.mxu0 %vm355_vm0, %v2765_v31 }
 0x9e6   : > { %v2491_v25 = vpop.f32.mrf.mxu0 }
 0x9e8   : > { %v1306_v28 = vpop.f32.mrf.mxu0 }
 0x9ea   : > { %v2494_v29 = vpop.f32.mrf.mxu0 }
 0x9ec   : > { %v1316_v31 = vpop.f32.mrf.mxu0 }
 0x9ee   : > { %v2497_v43 = vpop.f32.mrf.mxu0 }
 0x9ef   : > { %1351 = vrot.lane.b32.xlu0 %v2497_v43, %s2654_s15  ;;  %v1859_v43 = vld [vmem:[%s3215_s4 + $0x60] sm:$0xff] }
 0x9f0   : > { %v1326_v47 = vpop.f32.mrf.mxu0 }
 0x9f1   : > { %1349 = vrot.lane.b32.xlu1 %v1326_v47, %s2654_s15  ;;  %v1858_v47 = vld [vmem:[%s3215_s4 + $0x58] sm:$0xff] }
 0x9f2   : > { %v2500_v54 = vpop.f32.mrf.mxu0 }
 0x9f3   : > { %1355 = vrot.lane.b32.xlu0 %v2500_v54, %s2654_s15  ;;  %v1857_v54 = vld [vmem:[%s3215_s4 + $0x50] sm:$0xff] }
 0x9f4   : > { %v1336_v56 = vpop.f32.mrf.mxu0 }
 0x9f5   : > { %1353 = vrot.lane.b32.xlu1 %v1336_v56, %s2654_s15  ;;  %v1856_v56 = vld [vmem:[%s3215_s4 + $0x48] sm:$0xff] }
 0xa61   : > { %v1352_v58 = vpop.permute.xlu0 %1351 }
 0xa62   : > { %v1362_v59 = vsel %vm517_vm9, %v2491_v25, %v1352_v58  ;;  %v1863_v25 = vld [vmem:[%s3215_s4 + $0x80] sm:$0xff] }
 0xa63   : > { %v1350_v60 = vpop.permute.xlu1 %1349  ;;  %v1366_v4 = vsel %vm355_vm0, %v1362_v59, %v2786_v45  ;;  %v1855_v58 = vld [vmem:[%s3215_s4 + $0x40] sm:$0xff]  ;;  %v1854_v59 = vld [vmem:[%s3215_s4 + $0x38] sm:$0xff] }
 0xa64   : > { %v1361_v62 = vsel %vm517_vm9, %v1306_v28, %v1350_v60  ;;  %v1862_v28 = vld [vmem:[%s3215_s4 + $0x78] sm:$0xff]  ;;  %v1853_v60 = vld [vmem:[%s3215_s4 + $0x30] sm:$0xff] }
 0xa65   : > { %v1356_v0 = vpop.permute.xlu0 %1355  ;;  %v1365_v3 = vsel %vm355_vm0, %v1361_v62, %v2788_v46  ;;  %v1852_v62 = vld [vmem:[%s3215_s4 + $0x28] sm:$0xff] }
 0xa66   : > { %2507 = vmatprep.mubr.msk.f32.mxu1 %vm530_vm10, %v1365_v3  ;;  %v1364_v5 = vsel %vm517_vm9, %v2494_v29, %v1356_v0  ;;  %v1861_v29 = vld [vmem:[%s3215_s4 + $0x70] sm:$0xff]  ;;  %v1851_v0 = vld [vmem:[%s3215_s4 + $0x20] sm:$0xff]  ;;  %v1850_v3 = vld [vmem:[%s3215_s4 + $0x18] sm:$0xff] }
 0xa67   : > { %2508 = vmatmul.mubr.msk.f32.vlgmr.msra.gmra.mxu1 %vm530_vm10, %v1366_v4  ;;  %v1354_v7 = vpop.permute.xlu1 %1353  ;;  %v1368_v46 = vsel %vm355_vm0, %v1364_v5, %v2798_v55  ;;  %v1849_v4 = vld [vmem:[%s3215_s4 + $0x10] sm:$0xff]  ;;  %v2240_v5 = vld [vmem:[%s3215_s4 + $0x8] ss:$0 sm:$0xff] }
 0xa68   : > { %v1363_v8 = vsel %vm517_vm9, %v1316_v31, %v1354_v7  ;;  %v1860_v31 = vld [vmem:[%s3215_s4 + $0x68] sm:$0xff] }
 0xa69   : > { %v1367_v9 = vsel %vm355_vm0, %v1363_v8, %v2801_v57 }
 0xa6a   : > { %2510 = vmatprep.mubr.msk.f32.mxu1 %vm530_vm10, %v1367_v9 }
 0xa6b   : > { %2511 = vmatmul.mubr.msk.f32.gmra.mxu1 %vm530_vm10, %v1368_v46 }
 0xa6c   : > { %2521 = vmatprep.mubr.msk.f32.mxu1 %vm632_vm12, %v2820_v2 }
 0xb27   : > { %v2509_v45 = vpop.f32.mrf.mxu1 }
 0xb28   : > { %v1457_v57 = vadd.f32 %v2509_v45, %v2228_v11 }
 0xb29   : > { %v1451_v10 = vpop.f32.mrf.mxu1 }
 0xb2a   : > { %v1452_v22 = vadd.f32 %v2228_v11, %v1451_v10  ;;  %v1471_v55 = vmax.f32 %v1457_v57, 0.0 }
 0xb2b   : > { %v2512_v12 = vpop.f32.mrf.mxu1 }
 0xb2c   : > { %v1467_v13 = vadd.f32 %v2512_v12, %v2228_v11  ;;  %v1470_v2 = vmax.f32 %v1452_v22, 0.0 }
 0xb2d   : > { %v1461_v14 = vpop.f32.mrf.mxu1 }
 0xb2e   : > { %v1473_v18 = vmax.f32 %v1467_v13, 0.0  ;;  %v1462_v19 = vadd.f32 %v2228_v11, %v1461_v14 }
 0xb30   : > { %v1472_v24 = vmax.f32 %v1462_v19, 0.0  ;;  %2513 = vmatprep.subr.mxu1 %v1473_v18 }
 0xb31   : > { %2514 = vmatpush3.msra.mxu1 %v1473_v18 }
 0xb32   : > { %2515 = vmatprep.subr.mxu1 %v1472_v24 }
 0xb33   : > { %2516 = vmatpush3.msra.mxu1 %v1472_v24 }
 0xb34   : > { %2517 = vmatprep.subr.mxu1 %v1471_v55 }
 0xb35   : > { %2518 = vmatpush3.msra.mxu1 %v1471_v55 }
 0xb36   : > { %2519 = vmatprep.subr.mxu1 %v1470_v2 }
 0xb37   : > { %2520 = vmatpush3.msra.mxu1 %v1470_v2 }
 0xb38   : > { %2522 = vmatmul.mubr.msk.f32.vlgmr.msra.gmra.mxu1 %vm632_vm12, %v2829_v23  ;;  %2537 = vmatprep.subr.mxu1 %v2652_v15  ;;  %v2215_v23 = vld [vmem:[%s3214_s3 + $0xc8] sm:$0xff] }
 0xb39   : > { %2530 = vmatprep.subr.mxu0 %v2215_v23  ;;  %2541 = vmatprep.mubr.msk.f32.mxu1 %vm2655_vm2, %v2652_v15 }
 0xb3a   : > { %2531 = vmatpush3.msra.mxu0 %v2215_v23 }
 0xb3b   : > { %2532 = vmatprep.subr.mxu0 %v2214_v32 }
 0xb3c   : > { %2533 = vmatpush3.msra.mxu0 %v2214_v32 }
 0xb3d   : > { %2549 = vmatprep.subr.mxu0 %v2652_v15 }
 0xbf8   : > { %v2523_v33 = vpop.f32.mrf.mxu1 }
 0xbf9   : > { %1553 = vrot.lane.b32.xlu0 %v2523_v33, %s2654_s15  ;;  %v2242_v33 = vld [vmem:[%s3215_s4 + $0x9] ss:$0 sm:$0xff] }
 0xbfa   : > { %v1540_v34 = vpop.f32.mrf.mxu1 }
 0xbfb   : > { %1551 = vrot.lane.b32.xlu1 %v1540_v34, %s2654_s15 }
 0xc1f   : > { %1655 = vadd.xlane.f32.xlu1 %v1654_v17 }
 0xc6b   : > { %v1554_v38 = vpop.permute.xlu0 %1553 }
 0xc6c   : > { %v1558_v41 = vsel %vm517_vm9, %v2947_v51, %v1554_v38 }
 0xc6d   : > { %v1552_v39 = vpop.permute.xlu1 %1551 }
 0xc6e   : > { %v1557_v40 = vsel %vm517_vm9, %v2949_v53, %v1552_v39  ;;  %v1734_v53 = vld [vmem:[%s3215_s4] sm:$0xff]  ;;  %v1989_v39 = vld [vmem:[%s3215_s4 + $0x110] sm:$0xff] }
 0xc6f   : > { %2534 = vmatprep.mubr.msk.f32.mxu0 %vm728_vm14, %v1557_v40  ;;  %v1988_v40 = vld [vmem:[%s3215_s4 + $0x108] sm:$0xff] }
 0xc70   : > { %2535 = vmatmul.mubr.msk.f32.vlgmr.msra.gmra.mxu0 %vm728_vm14, %v1558_v41  ;;  %v1987_v41 = vld [vmem:[%s3215_s4 + $0x100] sm:$0xff] }
 0xc71   : > { %2581 = vmatprep.mubr.msk.f32.mxu0 %vm2655_vm2, %v2652_v15  ;;  %2550 = vmatpush3.msra.mxu0 %v1864_v21 }
 0xc72   : > { %2551 = vmatprep.subr.mxu0 %v2652_v15 }
 0xc73   : > { %2552 = vmatpush3.msra.mxu0 %v1863_v25 }
 0xc74   : > { %2553 = vmatprep.subr.mxu0 %v2652_v15 }
 0xc75   : > { %2554 = vmatpush3.msra.mxu0 %v1862_v28 }
 0xc76   : > { %2555 = vmatprep.subr.mxu0 %v2652_v15 }
 0xc77   : > { %2556 = vmatpush3.msra.mxu0 %v1861_v29 }
 0xc78   : > { %2557 = vmatprep.subr.mxu0 %v2652_v15 }
 0xc79   : > { %2558 = vmatpush3.msra.mxu0 %v1860_v31 }
 0xc7a   : > { %2559 = vmatprep.subr.mxu0 %v2652_v15 }
 0xc7b   : > { %2560 = vmatpush3.msra.mxu0 %v1859_v43 }
 0xc7c   : > { %2561 = vmatprep.subr.mxu0 %v2652_v15 }
 0xc7d   : > { %2562 = vmatpush3.msra.mxu0 %v1858_v47 }
 0xc7e   : > { %2563 = vmatprep.subr.mxu0 %v2652_v15 }
 0xc7f   : > { %2564 = vmatpush3.msra.mxu0 %v1857_v54 }
 0xc80   : > { %2565 = vmatprep.subr.mxu0 %v2652_v15 }
 0xc81   : > { %2566 = vmatpush3.msra.mxu0 %v1856_v56 }
 0xc82   : > { %2567 = vmatprep.subr.mxu0 %v2652_v15 }
 0xc83   : > { %2568 = vmatpush3.msra.mxu0 %v1855_v58 }
 0xc84   : > { %2569 = vmatprep.subr.mxu0 %v2652_v15 }
 0xc85   : > { %2570 = vmatpush3.msra.mxu0 %v1854_v59 }
 0xc86   : > { %2571 = vmatprep.subr.mxu0 %v2652_v15 }
 0xc87   : > { %2572 = vmatpush3.msra.mxu0 %v1853_v60 }
 0xc88   : > { %2573 = vmatprep.subr.mxu0 %v2652_v15 }
 0xc89   : > { %2574 = vmatpush3.msra.mxu0 %v1852_v62 }
 0xc8a   : > { %2575 = vmatprep.subr.mxu0 %v2652_v15 }
 0xc8b   : > { %2576 = vmatpush3.msra.mxu0 %v1851_v0 }
 0xc8c   : > { %2577 = vmatprep.subr.mxu0 %v2652_v15 }
 0xc8d   : > { %2578 = vmatpush3.msra.mxu0 %v1850_v3 }
 0xc8e   : > { %2579 = vmatprep.subr.mxu0 %v2652_v15 }
 0xc8f   : > { %2580 = vmatpush3.msra.mxu0 %v1849_v4 }
 0xca8   : > { %v1656_v61 = vpop.xlane.xlu1 %1655 }
 0xca9   : > { %v1657_v63 = vmax.f32 %v1656_v61, 1.0  ;;  %v1986_v61 = vld [vmem:[%s3215_s4 + $0xf8] sm:$0xff] }
 0xcab   : > { %2636 = vrcp.f32 %v1657_v63  ;;  %v1985_v63 = vld [vmem:[%s3215_s4 + $0xf0] sm:$0xff] }
 0xcb8   : > { %v2637_v1 = vpop.eup %2636 }
 0xcb9   : > { %v1660_v51 = vmul.f32 %v2637_v1, %v2238_v37  ;;  %v1982_v1 = vld [vmem:[%s3215_s4 + $0xd8] sm:$0xff] }
 0xd30   : > { %v2536_v44 = vpop.f32.mrf.mxu0 }
 0xd31   : > { %v1641_v6 = vadd.f32 %v2536_v44, %v2235_v42  ;;  %v1983_v44 = vld [vmem:[%s3215_s4 + $0xe0] sm:$0xff] }
 0xd32   : > { %v1635_v48 = vpop.f32.mrf.mxu0 }
 0xd33   : > { %v1645_v49 = vmax.f32 %v1641_v6, 0.0  ;;  %v1636_v50 = vadd.f32 %v2235_v42, %v1635_v48  ;;  %v1984_v42 = vld [vmem:[%s3215_s4 + $0xe8] sm:$0xff]  ;;  %v1981_v6 = vld [vmem:[%s3215_s4 + $0xd0] sm:$0xff] }
 0xd34   : > { %v1980_v48 = vld [vmem:[%s3215_s4 + $0xc8] sm:$0xff] }
 0xd35   : > { %v1644_v52 = vmax.f32 %v1636_v50, 0.0  ;;  %2538 = vmatpush3.msra.mxu1 %v1645_v49  ;;  %v1979_v49 = vld [vmem:[%s3215_s4 + $0xc0] sm:$0xff]  ;;  %v1978_v50 = vld [vmem:[%s3215_s4 + $0xb8] sm:$0xff] }
 0xd36   : > { %2539 = vmatprep.subr.mxu1 %v2652_v15 }
 0xd37   : > { %2540 = vmatpush3.msra.mxu1 %v1644_v52  ;;  %v1976_v52 = vld [vmem:[%s3215_s4 + $0xa8] sm:$0xff] }
 0xd38   : > { %2542 = vmatmul.mubr.msk.f32.vlgmr.msra.gmra.mxu1 %vm355_vm0, %v1660_v51  ;;  %2544 = vmatprep.subr.mxu1 %v2652_v15  ;;  %vm1815_vm0 = vcmask 1041408   ;;  %v1977_v51 = vld [vmem:[%s3215_s4 + $0xb0] sm:$0xff] }
 0xd39   : > { %2545 = vmatpush3.msra.mxu1 %v1734_v53  ;;  %2546 = vmatprep.mubr.msk.f32.mxu1 %vm2655_vm2, %v2652_v15  ;;  %v1975_v53 = vld [vmem:[%s3215_s4 + $0xa0] sm:$0xff] }
 0xd3a   : > { %2584 = vmatprep.subr.mxu1 %v2652_v15 }
 0xdf8   : > { %v1730_v16 = vpop.f32.mrf.mxu1 }
 0xdf9   : > { %2547 = vmatmul.mubr.msk.f32.vlgmr.msra.gmra.mxu1 %vm517_vm9, %v1730_v16  ;;  %v1974_v16 = vld [vmem:[%s3215_s4 + $0x98] sm:$0xff] }
 0xdfa   : > { %v2543_v20 = vpop.f32.mrf.mxu1  ;;  %2616 = vmatprep.mubr.msk.f32.mxu1 %vm2655_vm2, %v2652_v15  ;;  %2585 = vmatpush3.msra.mxu1 %v1989_v39 }
 0xdfb   : > { %2586 = vmatprep.subr.mxu1 %v2652_v15  ;;  %v2244_v20 = vld [vmem:[%s3215_s4 + $0x90] ss:$0 sm:$0xff] }
 0xdfc   : > { %2587 = vmatpush3.msra.mxu1 %v1988_v40 }
 0xdfd   : > { %2588 = vmatprep.subr.mxu1 %v2652_v15 }
 0xdfe   : > { %2589 = vmatpush3.msra.mxu1 %v1987_v41 }
 0xdff   : > { %2590 = vmatprep.subr.mxu1 %v2652_v15 }
 0xe00   : > { %2591 = vmatpush3.msra.mxu1 %v1986_v61 }
 0xe01   : > { %2592 = vmatprep.subr.mxu1 %v2652_v15 }
 0xe02   : > { %2593 = vmatpush3.msra.mxu1 %v1985_v63 }
 0xe03   : > { %2594 = vmatprep.subr.mxu1 %v2652_v15 }
 0xe04   : > { %2595 = vmatpush3.msra.mxu1 %v1984_v42 }
 0xe05   : > { %2596 = vmatprep.subr.mxu1 %v2652_v15 }
 0xe06   : > { %2597 = vmatpush3.msra.mxu1 %v1983_v44 }
 0xe07   : > { %2598 = vmatprep.subr.mxu1 %v2652_v15 }
 0xe08   : > { %2599 = vmatpush3.msra.mxu1 %v1982_v1 }
 0xe09   : > { %2600 = vmatprep.subr.mxu1 %v2652_v15 }
 0xe0a   : > { %2601 = vmatpush3.msra.mxu1 %v1981_v6 }
 0xe0b   : > { %2602 = vmatprep.subr.mxu1 %v2652_v15 }
 0xe0c   : > { %2603 = vmatpush3.msra.mxu1 %v1980_v48 }
 0xe0d   : > { %2604 = vmatprep.subr.mxu1 %v2652_v15 }
 0xe0e   : > { %2605 = vmatpush3.msra.mxu1 %v1979_v49 }
 0xe0f   : > { %2606 = vmatprep.subr.mxu1 %v2652_v15 }
 0xe10   : > { %2607 = vmatpush3.msra.mxu1 %v1978_v50 }
 0xe11   : > { %2608 = vmatprep.subr.mxu1 %v2652_v15 }
 0xe12   : > { %2609 = vmatpush3.msra.mxu1 %v1977_v51 }
 0xe13   : > { %2610 = vmatprep.subr.mxu1 %v2652_v15 }
 0xe14   : > { %2611 = vmatpush3.msra.mxu1 %v1976_v52 }
 0xe15   : > { %2612 = vmatprep.subr.mxu1 %v2652_v15 }
 0xe16   : > { %2613 = vmatpush3.msra.mxu1 %v1975_v53 }
 0xe17   : > { %2614 = vmatprep.subr.mxu1 %v2652_v15 }
 0xe18   : > { %2615 = vmatpush3.msra.mxu1 %v1974_v16 }
 0xeb9   : > { %v1809_v7 = vpop.f32.mrf.mxu1 }
 0xeba   : > { %v1810_v8 = vadd.f32 %v2240_v5, %v1809_v7 }
 0xebb   : > { %v2548_v9 = vpop.f32.mrf.mxu1 }
 0xebc   : > { %v1816_v46 = vsel %vm1815_vm0, %v1810_v8, 0.0 }
 0xebd   : > { %v1817_v45 = vrot.slane %v1816_v46, 4 }
 0xebf   : > { %v1818_v10 = vadd.f32 %v1817_v45, %v1816_v46  ;;  %v2245_v45 = vld [vmem:[%s3215_s4 + $0x91] ss:$0 sm:$0xff] }
 0xec1   : > { %v1819_v11 = vrot.slane %v1818_v10, 2 }
 0xec3   : > { %v1820_v12 = vadd.f32 %v1819_v11, %v1818_v10 }
 0xec5   : > { %v1821_v13 = vrot.slane %v1820_v12, 1 }
 0xec7   : > { %v1822_v14 = vadd.f32 %v1821_v13, %v1820_v12  ;;  %v2246_v12 = vld [vmem:[%s3215_s4 + $0x92] ss:$0 sm:$0xff] }
 0xec9   : > { %v1824_v57 = vmul.f32 0.5, %v1822_v14 }
 0xecb   : > { %v1825_v18 = vsub.f32 %v1810_v8, %v1824_v57 }
 0xecd   : > { %v1826_v19 = vmul.f32 %v1825_v18, %v1825_v18  ;;  %v1839_v34 = vmul.f32 %v2242_v33, %v1825_v18  ;;  %v2247_v18 = vld [vmem:[%s3215_s4 + $0x118] ss:$0 sm:$0xff] }
 0xecf   : > { %v1827_v22 = vsel %vm1815_vm0, %v1826_v19, 0.0 }
 0xed0   : > { %v1828_v24 = vrot.slane %v1827_v22, 4 }
 0xed2   : > { %v1829_v55 = vadd.f32 %v1828_v24, %v1827_v22 }
 0xed4   : > { %v1830_v2 = vrot.slane %v1829_v55, 2 }
 0xed6   : > { %v1831_v26 = vadd.f32 %v1830_v2, %v1829_v55 }
 0xed8   : > { %v1832_v27 = vrot.slane %v1831_v26, 1 }
 0xeda   : > { %v1833_v30 = vadd.f32 %v1832_v27, %v1831_v26 }
 0xedc   : > { %v1834_v23 = vmul.f32 0.5, %v1833_v30 }
 0xede   : > { %v1840_v32 = vadd.f32 1e-05, %v1834_v23 }
 0xee0   : > { %2638 = vrsqrt.f32 %v1840_v32 }
 0xeed   : > { %v2639_v35 = vpop.eup %2638 }
 0xeee   : > { %v1842_v37 = vmul.f32 %v2639_v35, %v1839_v34 }
 0xef0   : > { %v1847_v17 = vadd.f32 %v2243_v36, %v1842_v37 }
 0xef2   : > { %v1848_v38 = vmax.f32 %v1847_v17, 0.0 }
 0xef4   : > { %2582 = vmatmul.mubr.f32.vlgmr.msra.gmra.mxu0 %v1848_v38 }
 0xfb4   : > { %v1936_v21 = vpop.f32.mrf.mxu0 }
 0xfb5   : > { %v1937_v25 = vadd.f32 %v2244_v20, %v1936_v21 }
 0xfb6   : > { %v2583_v28 = vpop.f32.mrf.mxu0 }
 0xfb7   : > { %v1942_v29 = vsel %vm1815_vm0, %v1937_v25, 0.0 }
 0xfb8   : > { %v1943_v31 = vrot.slane %v1942_v29, 4 }
 0xfba   : > { %v1944_v43 = vadd.f32 %v1943_v31, %v1942_v29 }
 0xfbc   : > { %v1945_v47 = vrot.slane %v1944_v43, 2 }
 0xfbe   : > { %v1946_v54 = vadd.f32 %v1945_v47, %v1944_v43 }
 0xfc0   : > { %v1947_v56 = vrot.slane %v1946_v54, 1 }
 0xfc2   : > { %v1948_v58 = vadd.f32 %v1947_v56, %v1946_v54 }
 0xfc4   : > { %v1949_v59 = vmul.f32 0.5, %v1948_v58 }
 0xfc6   : > { %v1950_v60 = vsub.f32 %v1937_v25, %v1949_v59 }
 0xfc8   : > { %v1951_v62 = vmul.f32 %v1950_v60, %v1950_v60  ;;  %v1964_v10 = vmul.f32 %v2245_v45, %v1950_v60 }
 0xfca   : > { %v1952_v15 = vsel %vm1815_vm0, %v1951_v62, 0.0 }
 0xfcb   : > { %v1953_v0 = vrot.slane %v1952_v15, 4 }
 0xfcd   : > { %v1954_v3 = vadd.f32 %v1953_v0, %v1952_v15 }
 0xfcf   : > { %v1955_v4 = vrot.slane %v1954_v3, 2 }
 0xfd1   : > { %v1956_v5 = vadd.f32 %v1955_v4, %v1954_v3 }
 0xfd3   : > { %v1957_v7 = vrot.slane %v1956_v5, 1 }
 0xfd5   : > { %v1958_v8 = vadd.f32 %v1957_v7, %v1956_v5 }
 0xfd7   : > { %v1959_v9 = vmul.f32 0.5, %v1958_v8 }
 0xfd9   : > { %v1965_v46 = vadd.f32 1e-05, %v1959_v9 }
 0xfdb   : > { %2640 = vrsqrt.f32 %v1965_v46 }
 0xfe8   : > { %v2641_v11 = vpop.eup %2640 }
 0xfe9   : > { %v1967_v13 = vmul.f32 %v2641_v11, %v1964_v10 }
 0xfeb   : > { %v1972_v14 = vadd.f32 %v2246_v12, %v1967_v13 }
 0xfed   : > { %v1973_v57 = vmax.f32 %v1972_v14, 0.0 }
 0xfef   : > { %2617 = vmatmul.mubr.f32.vlgmr.msra.gmra.mxu1 %v1973_v57 }
0x10af   : > { %v2061_v19 = vpop.f32.mrf.mxu1 }
0x10b0   : > { %v2062_v22 = vadd.f32 %v2247_v18, %v2061_v19 }
0x10b1   : > { %v2618_v24 = vpop.f32.mrf.mxu1 }
0x10b2   : > { %2065 = vst [vmem:[%s262_s17] sm:$0x3] %v2062_v22 }
0x10b3 PF: > { %s15_s18 = sadd.s32 1, %s2648_s18  }
0x10b4   : > { %p12_p4 = scmp.ge.s32.totalorder %s15_s18, 10  }
0x10b6   :  { %14 = sbr.rel (!%p12_p4) target bundleno = 1 (0x1), region = 78 }

</bundles_post_ra>
